<compile_context>
chip_gen: v7x
topology: tpu7x:2x2x1
jax: 0.10.0
libtpu: 0.0.40
codegen_flags: <defaults>
</compile_context>

<pallas_src>
import functools

import jax
import jax.numpy as jnp
from jax.experimental import pallas as pl
from jax.experimental.pallas import tpu as pltpu


# --------------------------------- kernel body ---------------------------------

def _ffn_kernel(x_ref, prev_ref, state_ref, ln_w_ref, ln_b_ref, mix_ref,
                kw_ref, vw_ref, out_ref, state_out_ref, acc_ref, xk_ref):
    s = pl.program_id(0)          # sequence-tile index   (parallel)
    i = pl.program_id(1)          # intermediate-tile idx (reduction, innermost)
    n_i = pl.num_programs(1)

    # ---- once per sequence tile: LayerNorm, token shift, mix, residual seed ----
    @pl.when(i == 0)
    def _prologue():
        ln_w = ln_w_ref[...].astype(jnp.float32)                 # (1, H)
        ln_b = ln_b_ref[...].astype(jnp.float32)                 # (1, H)
        mix = mix_ref[...].astype(jnp.float32)                   # (1, H)
        one_minus_mix = 1.0 - mix

        def layernorm(v):
            mean = jnp.mean(v, axis=-1, keepdims=True)
            c = v - mean
            var = jnp.mean(c * c, axis=-1, keepdims=True)
            return c * jax.lax.rsqrt(var + 1e-5) * ln_w + ln_b

        x = x_ref[...].astype(jnp.float32)                       # (TS, H)
        acc_ref[...] = x                                         # residual seeds accumulator
        xn = layernorm(x)                                        # (TS, H)

        # last LN row of this tile == candidate state_out
        state_out_ref[...] = xn[-1:, :].reshape(state_out_ref.shape).astype(
            state_out_ref.dtype)

        # Fused mix with the token-shifted rows: xk = xn*(1-mix) + past*mix.
        # Bulk write uses the XLU roll (row 0 is garbage), then a single-row fixup store.
        shifted = pltpu.roll(xn, shift=1, axis=0)                # shifted[r] = xn[r-1]
        xk_ref[...] = (xn * one_minus_mix + shifted * mix).astype(xk_ref.dtype)

        # Row 0: previous token is the carried state (first tile, already in LN space)
        # or the LayerNorm of the raw halo row preceding this tile.
        prev_ln = layernorm(prev_ref[0].astype(jnp.float32))     # (1, H)
        prev_row = jnp.where(s == 0, state_ref[...].astype(jnp.float32), prev_ln)
        xk_ref[0:1, :] = (xn[0:1, :] * one_minus_mix + prev_row * mix).astype(xk_ref.dtype)

    # ---- per intermediate tile: key/value projections on the MXU (bf16 in, f32 acc) ----
    k = jnp.dot(xk_ref[...], kw_ref[...], preferred_element_type=jnp.float32)  # (TS, TI)
    k = jnp.maximum(k, 0.0)
    k = k * k
    acc_ref[...] += jnp.dot(k.astype(vw_ref.dtype), vw_ref[...],
                            preferred_element_type=jnp.float32)

    # ---- finalize this sequence tile ----
    @pl.when(i == n_i - 1)
    def _epilogue():
        out_ref[...] = acc_ref[...].astype(out_ref.dtype)


# ------------------------- generation-aware configuration -------------------------

def _physical_vmem_bytes():
    """Per-TensorCore VMEM capacity; conservative 64 MiB (v7x) if unknown."""
    default = 64 * 1024 * 1024
    get_info = getattr(pltpu, "get_tpu_info", None)
    if get_info is None:
        return default
    try:
        info = get_info()
    except Exception:
        return default
    for name in ("vmem_capacity_bytes", "vmem_size_bytes", "vmem_bytes"):
        val = getattr(info, name, None)
        if val:
            return int(val)
    return default


def _vmem_estimate(ts, ti, H, x_bytes, out_bytes, w_elem_bytes):
    est = 0
    est += 2 * ts * H * x_bytes                       # x tile, double-buffered
    est += 2 * ts * H * out_bytes                     # out tile, double-buffered
    est += 2 * (H * ti + ti * H) * w_elem_bytes       # key + value weight tiles, double-buffered
    est += ts * H * (4 + 2)                           # f32 accumulator + bf16 xk scratch
    est += 4 * ts * H * 4                             # headroom: live f32 prologue temporaries
    est += 16 * H * 4                                 # small (1, H) operands
    return est


def _ts_candidates(S):
    cands = [t for t in range(8, min(S, 1024) + 1, 8) if S % t == 0]
    if not cands:
        cands = [S]
    return sorted(set(cands), reverse=True)


def _select_tiles(S, H, I, x_bytes, out_bytes, w_elem_bytes, budget):
    """Pick (ts, ti).  Prefer ti == I (weights resident in VMEM, fetched once) and a ts
    that still leaves >= 2 sequence tiles so the parallel axis can feed both TensorCores
    on v7x / megacore on v5e-v6e."""
    ti_cands = [I] + [t for t in (8192, 4096, 2048, 1024, 512, 256, 128)
                      if t < I and I % t == 0]
    ts_all = _ts_candidates(S)
    for ti in ti_cands:
        fitting = [t for t in ts_all
                   if _vmem_estimate(t, ti, H, x_bytes, out_bytes, w_elem_bytes) <= budget]
        if not fitting:
            continue
        split = [t for t in fitting if S // t >= 2]
        return (split[0] if split else fitting[0]), ti
    return ts_all[-1], ti_cands[-1]


# --------------------------------- entry points ---------------------------------

def prepare_ffn_weights(key_weight, value_weight, dtype=jnp.bfloat16):
    """One-time (model-setup) weight prep: transpose to matmul layout, cast to bf16.

    key_weight:   (I, H)  -- nn.Linear(hidden_size, intermediate_size).weight
    value_weight: (H, I)  -- nn.Linear(intermediate_size, hidden_size).weight
    Returns kw (H, I), vw (I, H) in `dtype` (MXU-native). Done outside the hot path so no
    per-call f32->bf16 cast / transpose burns HBM bandwidth before the kernel runs.
    """
    kw = jnp.asarray(key_weight).T.astype(dtype)
    vw = jnp.asarray(value_weight).T.astype(dtype)
    return kw, vw


@functools.partial(jax.jit,
                   static_argnames=("ts", "ti", "vmem_limit_bytes", "out_dtype"))
def _rwkv7_ffn_call(x, state, ln_w, ln_b, x_k, kw, vw, *, ts, ti,
                    vmem_limit_bytes, out_dtype):
    S, H = x.shape
    I = kw.shape[1]
    num_s = S // ts
    num_i = I // ti

    # One raw-x halo row per sequence tile (entry 0 is unused: tile 0 uses `state`).
    starts = jnp.array([max(t * ts - 1, 0) for t in range(num_s)], dtype=jnp.int32)
    prev_rows = jnp.take(x, starts, axis=0)[:, None, :]          # (num_s, 1, H)

    out_bytes = jnp.dtype(out_dtype).itemsize
    w_total_bytes = (kw.size + vw.size) * kw.dtype.itemsize
    w_streams = 1 if num_i == 1 else num_s          # weights restream per sequence tile if tiled
    cost = pl.CostEstimate(
        flops=4 * S * H * I,
        transcendentals=0,
        bytes_accessed=(S * H * x.dtype.itemsize + S * H * out_bytes
                        + w_streams * w_total_bytes
                        + (num_s + 5) * H * x.dtype.itemsize),
    )

    grid_spec = pltpu.PrefetchScalarGridSpec(
        num_scalar_prefetch=0,
        grid=(num_s, num_i),
        in_specs=[
            pl.BlockSpec((ts, H), lambda s, i: (s, 0)),          # x tile
            pl.BlockSpec((1, 1, H), lambda s, i: (s, 0, 0)),     # raw halo row per tile
            pl.BlockSpec((1, H), lambda s, i: (0, 0)),           # state (LN space)
            pl.BlockSpec((1, H), lambda s, i: (0, 0)),           # ln_2 weight
            pl.BlockSpec((1, H), lambda s, i: (0, 0)),           # ln_2 bias
            pl.BlockSpec((1, H), lambda s, i: (0, 0)),           # x_k mix
            pl.BlockSpec((H, ti), lambda s, i: (0, i)),          # key weight tile (bf16)
            pl.BlockSpec((ti, H), lambda s, i: (i, 0)),          # value weight tile (bf16)
        ],
        out_specs=[
            pl.BlockSpec((ts, H), lambda s, i: (s, 0)),          # out
            pl.BlockSpec((1, 1, H), lambda s, i: (s, 0, 0)),     # per-tile last LN row
        ],
        scratch_shapes=[
            pltpu.VMEM((ts, H), jnp.float32),    # f32 accumulator (residual + value)
            pltpu.VMEM((ts, H), jnp.bfloat16),   # xk, computed once per sequence tile
        ],
    )

    out, state_rows = pl.pallas_call(
        _ffn_kernel,
        grid_spec=grid_spec,
        out_shape=(
            jax.ShapeDtypeStruct((S, H), out_dtype),
            jax.ShapeDtypeStruct((num_s, 1, H), x.dtype),
        ),
        compiler_params=pltpu.CompilerParams(
            dimension_semantics=("parallel", "arbitrary"),
            vmem_limit_bytes=vmem_limit_bytes),
        cost_estimate=cost,
    )(x, prev_rows, state, ln_w, ln_b, x_k, kw, vw)

    return out, state_rows[num_s - 1]


def rwkv7_feed_forward(x, state, ln_w, ln_b, x_k, kw, vw, *, ts=None, ti=None,
                       out_dtype=None):
    """x: (S, H); state/ln_w/ln_b/x_k: (1, H); kw: (H, I) bf16; vw: (I, H) bf16.

    Returns (out (S, H) in out_dtype (default x.dtype), state_out (1, H) = LN(x)[-1]).
    """
    S, H = x.shape
    I = kw.shape[1]
    out_dtype = jnp.dtype(out_dtype or x.dtype)

    phys = _physical_vmem_bytes()
    vmem_limit = int(phys * 0.85)            # headroom for Mosaic internal scratch (esp. v7x)
    budget = int(phys * 0.70)
    auto_ts, auto_ti = _select_tiles(S, H, I, x.dtype.itemsize, out_dtype.itemsize,
                                     kw.dtype.itemsize, budget)
    ts = ts or auto_ts
    ti = ti or auto_ti
    assert S % ts == 0 and (ts % 8 == 0 or ts == S), (S, ts)
    assert I % ti == 0 and (ti % 128 == 0 or ti == I), (I, ti)
    return _rwkv7_ffn_call(x, state, ln_w, ln_b, x_k, kw, vw, ts=ts, ti=ti,
                           vmem_limit_bytes=vmem_limit, out_dtype=out_dtype)


# ----------------------------- references (for testing) -----------------------------

def _reference_f32(x, state, ln_w, ln_b, x_k, key_w_t, value_w_t):
    mean = jnp.mean(x, axis=-1, keepdims=True)
    var = jnp.mean((x - mean) ** 2, axis=-1, keepdims=True)
    xn = (x - mean) * jax.lax.rsqrt(var + 1e-5) * ln_w + ln_b
    past = jnp.concatenate([state, xn[:-1, :]], axis=0)
    xk = xn + (past - xn) * x_k
    k = jnp.maximum(xk @ key_w_t, 0.0) ** 2
    v = k @ value_w_t
    return v + x, xn[-1:, :]


def _reference_bf16(x, state, ln_w, ln_b, x_k, kw_bf16, vw_bf16):
    # Same math, using the kernel's bf16 MXU operands (f32 accumulation).
    mean = jnp.mean(x, axis=-1, keepdims=True)
    var = jnp.mean((x - mean) ** 2, axis=-1, keepdims=True)
    xn = (x - mean) * jax.lax.rsqrt(var + 1e-5) * ln_w + ln_b
    past = jnp.concatenate([state, xn[:-1, :]], axis=0)
    xk = xn * (1.0 - x_k) + past * x_k
    k = jnp.dot(xk.astype(jnp.bfloat16), kw_bf16, preferred_element_type=jnp.float32)
    k = jnp.maximum(k, 0.0)
    k = k * k
    v = jnp.dot(k.astype(jnp.bfloat16), vw_bf16, preferred_element_type=jnp.float32)
    return v + x, xn[-1:, :]


if __name__ == "__main__":
    # Small, tile-friendly shapes: batch=1 (folded), seq=256, hidden=128, intermediate=512.
    S, H, I = 256, 128, 512
    key = jax.random.PRNGKey(0)
    k1, k2, k3, k4, k5, k6, k7 = jax.random.split(key, 7)

    x = jax.random.normal(k1, (S, H), dtype=jnp.float32)             # input (1, S, H), batch folded
    state = jax.random.normal(k2, (1, H), dtype=jnp.float32)         # ffn shift state (LN space)
    ln_w = 1.0 + 0.1 * jax.random.normal(k3, (1, H), dtype=jnp.float32)
    ln_b = 0.1 * jax.random.normal(k4, (1, H), dtype=jnp.float32)
    x_k = jax.random.uniform(k5, (1, 1, H), dtype=jnp.float32).reshape(1, H)
    key_weight = 0.05 * jax.random.normal(k6, (I, H), dtype=jnp.float32)    # nn.Linear(H, I).weight
    value_weight = 0.05 * jax.random.normal(k7, (H, I), dtype=jnp.float32)  # nn.Linear(I, H).weight

    # One-time weight prep (transpose + bf16 cast) — outside the per-call hot path.
    kw, vw = prepare_ffn_weights(key_weight, value_weight)

    ref_out_f32, ref_state = _reference_f32(x, state, ln_w, ln_b, x_k,
                                            key_weight.T, value_weight.T)
    ref_out_bf16, _ = _reference_bf16(x, state, ln_w, ln_b, x_k, kw, vw)

    # Config 1: auto-selected tiles (expect ti == I -> weights resident, num_s >= 2).
    out, state_out = rwkv7_feed_forward(x, state, ln_w, ln_b, x_k, kw, vw)
    jax.block_until_ready((out, state_out))

    # Config 2: forced intermediate-axis split, exercising the f32 accumulation path.
    out2, state_out2 = rwkv7_feed_forward(x, state, ln_w, ln_b, x_k, kw, vw,
                                          ts=128, ti=256)
    jax.block_until_ready((out2, state_out2))

    for o, st in ((out, state_out), (out2, state_out2)):
        assert o.shape == (S, H) and st.shape == (1, H)
        # state_out is pure f32 LayerNorm -> tight check against the f32 reference.
        assert jnp.allclose(st, ref_state, atol=1e-5, rtol=1e-5), "state mismatch"
        # output: tight check against a reference using the same bf16 MXU operands,
        # plus a loose sanity check against the full-f32 PyTorch-equivalent math.
        assert jnp.allclose(o, ref_out_bf16, atol=2e-3, rtol=2e-3), "output mismatch (bf16 ref)"
        assert jnp.allclose(o, ref_out_f32, atol=1e-1, rtol=5e-2), "output mismatch (f32 ref)"

    print("KERNEL_OK")
</pallas_src>

<mosaic_0001>
module attributes {stable_mosaic.version = 11 : i64} {
  func.func @_ffn_kernel(%arg0: i32, %arg1: i32, %arg2: memref<128x128xf32, #tpu.memory_space<vmem>>, %arg3: memref<1x1x128xf32, #tpu.memory_space<vmem>>, %arg4: memref<1x128xf32, #tpu.memory_space<vmem>>, %arg5: memref<1x128xf32, #tpu.memory_space<vmem>>, %arg6: memref<1x128xf32, #tpu.memory_space<vmem>>, %arg7: memref<1x128xf32, #tpu.memory_space<vmem>>, %arg8: memref<128x512xbf16, #tpu.memory_space<vmem>>, %arg9: memref<512x128xbf16, #tpu.memory_space<vmem>>, %arg10: memref<128x128xf32, #tpu.memory_space<vmem>>, %arg11: memref<1x1x128xf32, #tpu.memory_space<vmem>>, %arg12: memref<128x128xf32, #tpu.memory_space<vmem>>, %arg13: memref<128x128xbf16, #tpu.memory_space<vmem>>) attributes {dimension_semantics = [#tpu.dimension_semantics<parallel>, #tpu.dimension_semantics<arbitrary>], iteration_bounds = array<i64: 2, 1>, scalar_prefetch = 0 : i64, scratch_operands = 2 : i64, tpu.core_type = #tpu.core_type<tc>, window_params = [{transform_indices = @transform_0, window_bounds = array<i64: 128, 128>}, {transform_indices = @transform_1, window_bounds = array<i64: 1, 1, 128>}, {pipeline_mode = #tpu.pipeline_mode<synchronous>, transform_indices = @transform_2, window_bounds = array<i64: 1, 128>}, {pipeline_mode = #tpu.pipeline_mode<synchronous>, transform_indices = @transform_3, window_bounds = array<i64: 1, 128>}, {pipeline_mode = #tpu.pipeline_mode<synchronous>, transform_indices = @transform_4, window_bounds = array<i64: 1, 128>}, {pipeline_mode = #tpu.pipeline_mode<synchronous>, transform_indices = @transform_5, window_bounds = array<i64: 1, 128>}, {transform_indices = @transform_6, window_bounds = array<i64: 128, 512>}, {transform_indices = @transform_7, window_bounds = array<i64: 512, 128>}, {transform_indices = @transform_8, window_bounds = array<i64: 128, 128>}, {transform_indices = @transform_9, window_bounds = array<i64: 1, 1, 128>}]} {
    %c0_i32 = arith.constant 0 : i32
    %0 = arith.cmpi eq, %arg1, %c0_i32 : i32
    %1 = arith.extui %0 : i1 to i32
    %c0_i32_0 = arith.constant 0 : i32
    %2 = arith.cmpi ne, %1, %c0_i32_0 : i32
    scf.if %2 {
      %c0_14 = arith.constant 0 : index
      %c0_15 = arith.constant 0 : index
      %18 = vector.load %arg5[%c0_14, %c0_15] : memref<1x128xf32, #tpu.memory_space<vmem>>, vector<1x128xf32>
      %c0_16 = arith.constant 0 : index
      %c0_17 = arith.constant 0 : index
      %19 = vector.load %arg6[%c0_16, %c0_17] : memref<1x128xf32, #tpu.memory_space<vmem>>, vector<1x128xf32>
      %c0_18 = arith.constant 0 : index
      %c0_19 = arith.constant 0 : index
      %20 = vector.load %arg7[%c0_18, %c0_19] : memref<1x128xf32, #tpu.memory_space<vmem>>, vector<1x128xf32>
      %cst_20 = arith.constant 1.000000e+00 : f32
      %21 = vector.broadcast %cst_20 : f32 to vector<1x128xf32>
      %22 = arith.subf %21, %20 : vector<1x128xf32>
      %c0_21 = arith.constant 0 : index
      %c0_22 = arith.constant 0 : index
      %23 = vector.load %arg2[%c0_21, %c0_22] : memref<128x128xf32, #tpu.memory_space<vmem>>, vector<128x128xf32>
      %c0_23 = arith.constant 0 : index
      %c0_24 = arith.constant 0 : index
      %24 = vector.load %arg12[%c0_23, %c0_24] : memref<128x128xf32, #tpu.memory_space<vmem>>, vector<128x128xf32>
      tpu.vector_store %arg12[%c0_23, %c0_24], %23 {strides = array<i32>} : memref<128x128xf32, #tpu.memory_space<vmem>>, vector<128x128xf32>,
      %cst_25 = arith.constant dense<0.000000e+00> : vector<128xf32>
      %25 = vector.multi_reduction <add>, %23, %cst_25 [1] : vector<128x128xf32> to vector<128xf32>
      %26 = vector.shape_cast %25 : vector<128xf32> to vector<128x1xf32>
      %cst_26 = arith.constant 1.280000e+02 : f32
      %27 = vector.broadcast %cst_26 : f32 to vector<128x1xf32>
      %28 = arith.divf %26, %27 : vector<128x1xf32>
      %29 = vector.broadcast %28 : vector<128x1xf32> to vector<128x128xf32>
      %30 = arith.subf %23, %29 : vector<128x128xf32>
      %31 = arith.mulf %30, %30 : vector<128x128xf32>
      %cst_27 = arith.constant dense<0.000000e+00> : vector<128xf32>
      %32 = vector.multi_reduction <add>, %31, %cst_27 [1] : vector<128x128xf32> to vector<128xf32>
      %33 = vector.shape_cast %32 : vector<128xf32> to vector<128x1xf32>
      %cst_28 = arith.constant 1.280000e+02 : f32
      %34 = vector.broadcast %cst_28 : f32 to vector<128x1xf32>
      %35 = arith.divf %33, %34 : vector<128x1xf32>
      %cst_29 = arith.constant 9.99999974E-6 : f32
      %36 = vector.broadcast %cst_29 : f32 to vector<128x1xf32>
      %37 = arith.addf %35, %36 : vector<128x1xf32>
      %38 = math.rsqrt %37 : vector<128x1xf32>
      %39 = vector.broadcast %38 : vector<128x1xf32> to vector<128x128xf32>
      %40 = arith.mulf %30, %39 : vector<128x128xf32>
      %41 = vector.broadcast %18 : vector<1x128xf32> to vector<128x128xf32>
      %42 = arith.mulf %40, %41 : vector<128x128xf32>
      %43 = vector.broadcast %19 : vector<1x128xf32> to vector<128x128xf32>
      %44 = arith.addf %42, %43 : vector<128x128xf32>
      %45 = vector.extract_strided_slice %44 {offsets = [127, 0], sizes = [1, 128], strides = [1, 1]} : vector<128x128xf32> to vector<1x128xf32>
      %46 = vector.shape_cast %45 : vector<1x128xf32> to vector<1x1x128xf32>
      %c0_30 = arith.constant 0 : index
      %c0_31 = arith.constant 0 : index
      %c0_32 = arith.constant 0 : index
      %47 = vector.load %arg11[%c0_30, %c0_31, %c0_32] : memref<1x1x128xf32, #tpu.memory_space<vmem>>, vector<1x1x128xf32>
      tpu.vector_store %arg11[%c0_30, %c0_31, %c0_32], %46 {strides = array<i32>} : memref<1x1x128xf32, #tpu.memory_space<vmem>>, vector<1x1x128xf32>,
      %c1_i32 = arith.constant 1 : i32
      %48 = tpu.dynamic_rotate %44 by %c1_i32 dim 0 : vector<128x128xf32>, i32 -> vector<128x128xf32>
      %49 = vector.broadcast %22 : vector<1x128xf32> to vector<128x128xf32>
      %50 = arith.mulf %44, %49 : vector<128x128xf32>
      %51 = vector.broadcast %20 : vector<1x128xf32> to vector<128x128xf32>
      %52 = arith.mulf %48, %51 : vector<128x128xf32>
      %53 = arith.addf %50, %52 : vector<128x128xf32>
      %54 = arith.truncf %53 : vector<128x128xf32> to vector<128x128xbf16>
      %c0_33 = arith.constant 0 : index
      %c0_34 = arith.constant 0 : index
      %55 = vector.load %arg13[%c0_33, %c0_34] : memref<128x128xbf16, #tpu.memory_space<vmem>>, vector<128x128xbf16>
      tpu.vector_store %arg13[%c0_33, %c0_34], %54 {strides = array<i32>} : memref<128x128xbf16, #tpu.memory_space<vmem>>, vector<128x128xbf16>,
      %c0_35 = arith.constant 0 : index
      %c0_36 = arith.constant 0 : index
      %c0_37 = arith.constant 0 : index
      %56 = vector.load %arg3[%c0_35, %c0_36, %c0_37] : memref<1x1x128xf32, #tpu.memory_space<vmem>>, vector<1x1x128xf32>
      %57 = vector.shape_cast %56 : vector<1x1x128xf32> to vector<1x128xf32>
      %cst_38 = arith.constant dense<0.000000e+00> : vector<1xf32>
      %58 = vector.multi_reduction <add>, %57, %cst_38 [1] : vector<1x128xf32> to vector<1xf32>
      %59 = vector.shape_cast %58 : vector<1xf32> to vector<1x1xf32>
      %cst_39 = arith.constant 1.280000e+02 : f32
      %60 = vector.broadcast %cst_39 : f32 to vector<1x1xf32>
      %61 = arith.divf %59, %60 : vector<1x1xf32>
      %62 = vector.broadcast %61 : vector<1x1xf32> to vector<1x128xf32>
      %63 = arith.subf %57, %62 : vector<1x128xf32>
      %64 = arith.mulf %63, %63 : vector<1x128xf32>
      %cst_40 = arith.constant dense<0.000000e+00> : vector<1xf32>
      %65 = vector.multi_reduction <add>, %64, %cst_40 [1] : vector<1x128xf32> to vector<1xf32>
      %66 = vector.shape_cast %65 : vector<1xf32> to vector<1x1xf32>
      %cst_41 = arith.constant 1.280000e+02 : f32
      %67 = vector.broadcast %cst_41 : f32 to vector<1x1xf32>
      %68 = arith.divf %66, %67 : vector<1x1xf32>
      %cst_42 = arith.constant 9.99999974E-6 : f32
      %69 = vector.broadcast %cst_42 : f32 to vector<1x1xf32>
      %70 = arith.addf %68, %69 : vector<1x1xf32>
      %71 = math.rsqrt %70 : vector<1x1xf32>
      %72 = vector.broadcast %71 : vector<1x1xf32> to vector<1x128xf32>
      %73 = arith.mulf %63, %72 : vector<1x128xf32>
      %74 = arith.mulf %73, %18 : vector<1x128xf32>
      %75 = arith.addf %74, %19 : vector<1x128xf32>
      %c0_i32_43 = arith.constant 0 : i32
      %76 = arith.cmpi eq, %arg0, %c0_i32_43 : i32
      %c0_44 = arith.constant 0 : index
      %c0_45 = arith.constant 0 : index
      %77 = vector.load %arg4[%c0_44, %c0_45] : memref<1x128xf32, #tpu.memory_space<vmem>>, vector<1x128xf32>
      %78 = arith.select %76, %77, %75 : vector<1x128xf32>
      %79 = vector.extract_strided_slice %44 {offsets = [0, 0], sizes = [1, 128], strides = [1, 1]} : vector<128x128xf32> to vector<1x128xf32>
      %80 = arith.mulf %79, %22 : vector<1x128xf32>
      %81 = arith.mulf %78, %20 : vector<1x128xf32>
      %82 = arith.addf %80, %81 : vector<1x128xf32>
      %83 = arith.truncf %82 : vector<1x128xf32> to vector<1x128xbf16>
      %c0_46 = arith.constant 0 : index
      %c0_47 = arith.constant 0 : index
      %84 = vector.load %arg13[%c0_46, %c0_47] : memref<128x128xbf16, #tpu.memory_space<vmem>>, vector<1x128xbf16>
      tpu.vector_store %arg13[%c0_46, %c0_47], %83 {strides = array<i32>} : memref<128x128xbf16, #tpu.memory_space<vmem>>, vector<1x128xbf16>,
    } else {
    }
    %c0 = arith.constant 0 : index
    %c0_1 = arith.constant 0 : index
    %3 = vector.load %arg13[%c0, %c0_1] : memref<128x128xbf16, #tpu.memory_space<vmem>>, vector<128x128xbf16>
    %c0_2 = arith.constant 0 : index
    %c0_3 = arith.constant 0 : index
    %4 = vector.load %arg8[%c0_2, %c0_3] : memref<128x512xbf16, #tpu.memory_space<vmem>>, vector<128x512xbf16>
    %cst = arith.constant dense<0.000000e+00> : vector<128x512xf32>
    %5 = tpu.matmul %3, %4, %cst {dimension_numbers = #tpu.dot_dimension_numbers<[1], [0], [0], [1], [0, 0, 1, 1], [], []>} : vector<128x128xbf16>, vector<128x512xbf16>, vector<128x512xf32> -> vector<128x512xf32>
    %cst_4 = arith.constant 0.000000e+00 : f32
    %6 = vector.broadcast %cst_4 : f32 to vector<128x512xf32>
    %7 = arith.maximumf %5, %6 : vector<128x512xf32>
    %8 = arith.mulf %7, %7 : vector<128x512xf32>
    %c0_5 = arith.constant 0 : index
    %c0_6 = arith.constant 0 : index
    %9 = vector.load %arg12[%c0_5, %c0_6] : memref<128x128xf32, #tpu.memory_space<vmem>>, vector<128x128xf32>
    %10 = arith.truncf %8 : vector<128x512xf32> to vector<128x512xbf16>
    %c0_7 = arith.constant 0 : index
    %c0_8 = arith.constant 0 : index
    %11 = vector.load %arg9[%c0_7, %c0_8] : memref<512x128xbf16, #tpu.memory_space<vmem>>, vector<512x128xbf16>
    %cst_9 = arith.constant dense<0.000000e+00> : vector<128x128xf32>
    %12 = tpu.matmul %10, %11, %cst_9 {dimension_numbers = #tpu.dot_dimension_numbers<[1], [0], [0], [1], [0, 0, 1, 1], [], []>} : vector<128x512xbf16>, vector<512x128xbf16>, vector<128x128xf32> -> vector<128x128xf32>
    %13 = arith.addf %9, %12 : vector<128x128xf32>
    %c0_10 = arith.constant 0 : index
    %c0_11 = arith.constant 0 : index
    %14 = vector.load %arg12[%c0_10, %c0_11] : memref<128x128xf32, #tpu.memory_space<vmem>>, vector<128x128xf32>
    tpu.vector_store %arg12[%c0_10, %c0_11], %13 {strides = array<i32>} : memref<128x128xf32, #tpu.memory_space<vmem>>, vector<128x128xf32>,
    %c0_i32_12 = arith.constant 0 : i32
    %15 = arith.cmpi eq, %arg1, %c0_i32_12 : i32
    %16 = arith.extui %15 : i1 to i32
    %c0_i32_13 = arith.constant 0 : i32
    %17 = arith.cmpi ne, %16, %c0_i32_13 : i32
    scf.if %17 {
      %c0_14 = arith.constant 0 : index
      %c0_15 = arith.constant 0 : index
      %18 = vector.load %arg12[%c0_14, %c0_15] : memref<128x128xf32, #tpu.memory_space<vmem>>, vector<128x128xf32>
      %c0_16 = arith.constant 0 : index
      %c0_17 = arith.constant 0 : index
      %19 = vector.load %arg10[%c0_16, %c0_17] : memref<128x128xf32, #tpu.memory_space<vmem>>, vector<128x128xf32>
      tpu.vector_store %arg10[%c0_16, %c0_17], %18 {strides = array<i32>} : memref<128x128xf32, #tpu.memory_space<vmem>>, vector<128x128xf32>,
    } else {
    }
    return
  }
  func.func @transform_0(%arg0: i32, %arg1: i32) -> (i32, i32) {
    %c0_i32 = arith.constant 0 : i32
    %c0_i32_0 = arith.constant 0 : i32
    return %arg0, %c0_i32 : i32, i32
  }
  func.func @transform_1(%arg0: i32, %arg1: i32) -> (i32, i32, i32) {
    %c0_i32 = arith.constant 0 : i32
    %c0_i32_0 = arith.constant 0 : i32
    %c0_i32_1 = arith.constant 0 : i32
    return %arg0, %c0_i32, %c0_i32_0 : i32, i32, i32
  }
  func.func @transform_2(%arg0: i32, %arg1: i32) -> (i32, i32) {
    %c0_i32 = arith.constant 0 : i32
    %c0_i32_0 = arith.constant 0 : i32
    %c0_i32_1 = arith.constant 0 : i32
    return %c0_i32, %c0_i32_0 : i32, i32
  }
  func.func @transform_3(%arg0: i32, %arg1: i32) -> (i32, i32) {
    %c0_i32 = arith.constant 0 : i32
    %c0_i32_0 = arith.constant 0 : i32
    %c0_i32_1 = arith.constant 0 : i32
    return %c0_i32, %c0_i32_0 : i32, i32
  }
  func.func @transform_4(%arg0: i32, %arg1: i32) -> (i32, i32) {
    %c0_i32 = arith.constant 0 : i32
    %c0_i32_0 = arith.constant 0 : i32
    %c0_i32_1 = arith.constant 0 : i32
    return %c0_i32, %c0_i32_0 : i32, i32
  }
  func.func @transform_5(%arg0: i32, %arg1: i32) -> (i32, i32) {
    %c0_i32 = arith.constant 0 : i32
    %c0_i32_0 = arith.constant 0 : i32
    %c0_i32_1 = arith.constant 0 : i32
    return %c0_i32, %c0_i32_0 : i32, i32
  }
  func.func @transform_6(%arg0: i32, %arg1: i32) -> (i32, i32) {
    %c0_i32 = arith.constant 0 : i32
    %c0_i32_0 = arith.constant 0 : i32
    return %c0_i32, %arg1 : i32, i32
  }
  func.func @transform_7(%arg0: i32, %arg1: i32) -> (i32, i32) {
    %c0_i32 = arith.constant 0 : i32
    %c0_i32_0 = arith.constant 0 : i32
    return %arg1, %c0_i32 : i32, i32
  }
  func.func @transform_8(%arg0: i32, %arg1: i32) -> (i32, i32) {
    %c0_i32 = arith.constant 0 : i32
    %c0_i32_0 = arith.constant 0 : i32
    return %arg0, %c0_i32 : i32, i32
  }
  func.func @transform_9(%arg0: i32, %arg1: i32) -> (i32, i32, i32) {
    %c0_i32 = arith.constant 0 : i32
    %c0_i32_0 = arith.constant 0 : i32
    %c0_i32_1 = arith.constant 0 : i32
    return %arg0, %c0_i32, %c0_i32_0 : i32, i32, i32
  }
}

</mosaic_0001>

<bundles_post_ra>
// kernel: _rwkv7_ffn_call.1
= control target key start
LH: loop header
LB: loop body
LE: loop exit
PB: predicated region body
PF: predicated region fallthrough
CT: control target
= control target key end

     0   :  { %s3429_s0 = inlined_call_operand.hbm [shape: f32[256,128], index: 0, kind: input, shape index: {}]   ;;  %s3430_s1 = inlined_call_operand.vmem [shape: f32[2,1,128], index: 1, kind: input, shape index: {}]   ;;  %s3431_s2 = inlined_call_operand.vmem [shape: f32[1,128], index: 2, kind: input, shape index: {}]   ;;  %s3432_s3 = inlined_call_operand.vmem [shape: f32[1,128], index: 3, kind: input, shape index: {}]   ;;  %s3433_s4 = inlined_call_operand.vmem [shape: f32[1,128], index: 4, kind: input, shape index: {}]   ;;  %s3434_s5 = inlined_call_operand.vmem [shape: f32[1,128], index: 5, kind: input, shape index: {}]   ;;  %s3435_s6 = inlined_call_operand.hbm [shape: bf16[128,512], index: 6, kind: input, shape index: {}]   ;;  %s3436_s7 = inlined_call_operand.hbm [shape: bf16[512,128], index: 7, kind: input, shape index: {}]   ;;  %s3437_s8 = inlined_call_operand.hbm [shape: f32[256,128], index: 8, kind: output, shape index: {0}]   ;;  %s3438_s9 = inlined_call_operand.vmem [shape: f32[2,1,128], index: 9, kind: output, shape index: {1}]  }
   0x1   :  { %3446 = sst [smem:[#allocation16_spill]] %s3431_s2 }
   0x2   :  { %3447 = sst [smem:[#allocation17_spill]] %s3437_s8 }
   0x3   :  { %15 = vsyncpa [#allocation5], 0 }
   0x4   :  { %17 = vsyncpa [#allocation5 + $0x1], 0 }
   0x5   :  { %18 = vsyncpa [#allocation8], 0 }
   0x6   :  { %19 = vsyncpa [#allocation6], 0 }
   0x7   :  { %21 = vsyncpa [#allocation6 + $0x1], 0  ;;  %s2785_s30 = smov 0   ;;  %s2787_s10 = smov 0  }
   0x8   :  { %s2789_s11 = smov 0   ;;  %s2791_s12 = smov 0  }
   0x9   :  { %s2793_s13 = smov 0   ;;  %s2795_s14 = smov 0  }
   0xa LB: > { %3448 = sst [smem:[#allocation14_spill]] %s2700_s30  ;;  %s2113_s15 = sadd.s32 4294967295, %s2720_s14   ;;  %s2720_s14 = sphi %s2795_s14, %s27_s14   ;;  %s2716_s13 = sphi %s2793_s13, %s3473_s13   ;;  %s2712_s12 = sphi %s2791_s12, %s3472_s12   ;;  %s2708_s11 = sphi %s2789_s11, %s3471_s11   ;;  %s2704_s10 = sphi %s2787_s10, %s3470_s10   ;;  %s2700_s30 = sphi %s2785_s30, %s3469_s30  }
   0xb   : > { %s2114_s16 = sadd.s32 4294967294, %s2720_s14   ;;  %p59_p0 = scmp.ne.s32.totalorder %s2704_s10, %s2700_s30 }
   0xc   : > { %p2819_p1 = scmp.eq.s32.totalorder %s2113_s15, 0  ;;  %p2823_p2 = scmp.eq.s32.totalorder %s2113_s15, 1 }
   0xd   : > { %p251_p3 = scmp.eq.s32.totalorder %s2114_s16, 1  ;;  %p2115_p5 = scmp.ge.s32.totalorder %s2720_s14, 1 }
   0xe   : > { %s3449_s17 = scalar_select %p2819_p1, 1, 0 }
   0xf   : > { %p2829_p4 = por %p2819_p1, %p59_p0  ;;  %p2834_p6 = por %p251_p3, %p59_p0 }
  0x10   : > { %p284_p7 = scmp.lt.s32.totalorder %s2720_s14, 3  ;;  %s2722_s22 = smov [#allocation7]  }
  0x11   : > { %s3451_s19 = scalar_select %p2829_p4, 1, 0 }
  0x12   : > { %s3452_s20 = scalar_select %p2834_p6, 1, 0 }
  0x13   : > { %p2839_p8 = pnand %p2115_p5, %p284_p7  ;;  %s311_s23 = sshll.u32 %s2722_s22, 4  ;;  %s2843_s23 = int_to_ptr.vmem [resolvable:$true] %s311_s23 }
  0x14   : > { %3453 = sst [smem:[#allocation15_spill]] %s3452_s20  ;;  %s2723_s25 = smov [#allocation9]  }
  0x15   : > { %p2338_p9 = pneg %p2839_p8  ;;  %s327_s26 = sshll.u32 %s2723_s25, 4  ;;  %s2854_s26 = int_to_ptr.vmem [resolvable:$true] %s327_s26 }
  0x16   : > { %s2548_s29 = scalar_lea.hbm %s3435_s6, 4096 }
  0x17   : > { %p2850_p11 = pnand %p2338_p9, %p2819_p1  ;;  %p2549_p12 = scmp.ne.s32.totalorder %s3435_s6, %s2548_s29 }
  0x18   : > { %p2555_p5 = scmp.lt.u32.totalorder %s2548_s29, %s3435_s6 }
  0x19   : > { %p2550_p13 = pneg %p2850_p11 }
  0x1b   : > { %p2551_p0 = pnand %p2550_p13, %p2549_p12 }
  0x1d   : > { %p2552_p3 = pneg %p2551_p0 }
  0x1f   : > { %p2557_p7 = pnand %p2555_p5, %p2552_p3 }
  0x21   : > { %2560 = shalt.err (!%p2557_p7)
}
  0x22   : > { %s2561_s25 = scalar_lea.vmem %s2843_s23, 4096  ;;  %p2569_p1 = scmp.lt.s32.totalorder %s2843_s23, %s2843_s23 }
  0x23   : > { %p2562_p9 = scmp.ne.s32.totalorder %s2843_s23, %s2561_s25  ;;  %p2570_p12 = scmp.lt.s32.totalorder %s2561_s25, %s2561_s25 }
  0x25   : > { %p2564_p10 = pnand %p2562_p9, %p2550_p13  ;;  %p2571_p0 = por %p2570_p12, %p2569_p1 }
  0x27   : > { %p2565_p6 = pneg %p2564_p10 }
  0x29   : > { %p2572_p4 = pnand %p2571_p0, %p2565_p6 }
  0x2b   : > { %2575 = shalt.err (!%p2572_p4)
}
  0x2c   : > { %s2724_s20 = smov 256   ;;  %s2725_s27 = smov 16  }
  0x2d   : > { %2341 = dma.hbm_to_vmem [thread:$0]  (!%p2850_p11), %s3435_s6, 4096, %s2843_s23, [#allocation8], %s2724_s20, %s2724_s20, %s2725_s27  }
  0x2e   : > { %s2576_s22 = scalar_lea.hbm %s3436_s7, 4096 }
  0x2f   : > { %p2577_p1 = scmp.ne.s32.totalorder %s3436_s7, %s2576_s22  ;;  %p2583_p10 = scmp.lt.u32.totalorder %s2576_s22, %s3436_s7 }
  0x31   : > { %p2579_p4 = pnand %p2577_p1, %p2550_p13 }
  0x33   : > { %p2580_p6 = pneg %p2579_p4 }
  0x35   : > { %p2585_p3 = pnand %p2583_p10, %p2580_p6 }
  0x37   : > { %2588 = shalt.err (!%p2585_p3)
}
  0x38   : > { %s2589_s23 = scalar_lea.vmem %s2854_s26, 4096  ;;  %p2597_p12 = scmp.lt.s32.totalorder %s2854_s26, %s2854_s26 }
  0x39   : > { %p2590_p5 = scmp.ne.s32.totalorder %s2854_s26, %s2589_s23  ;;  %p2598_p0 = scmp.lt.s32.totalorder %s2589_s23, %s2589_s23 }
  0x3b   : > { %p2592_p7 = pnand %p2590_p5, %p2550_p13  ;;  %p2599_p1 = por %p2598_p0, %p2597_p12 }
  0x3d   : > { %p2593_p9 = pneg %p2592_p7 }
  0x3f   : > { %p2600_p4 = pnand %p2599_p1, %p2593_p9 }
  0x41   : > { %2603 = shalt.err (!%p2600_p4)
}
  0x42   : > { %s2726_s2 = smov 64   ;;  %s2727_s8 = smov 4  }
  0x43   : > { %2344 = dma.hbm_to_vmem [thread:$0]  (!%p2850_p11), %s3436_s7, 4096, %s2854_s26, [#allocation8], %s2726_s2, %s2726_s2, %s2727_s8  }
  0x44   : > { %s39_s27 = sadd.s32 1, %s2716_s13  ;;  %s46_s28 = sadd.s32 1, %s2708_s11 }
  0x45   : > { %p41_p13 = scmp.ge.s32.totalorder %s39_s27, 2  ;;  %p53_p6 = scmp.ne.s32.totalorder %s2708_s11, %s2704_s10 }
  0x46   : > { %p54_p10 = scmp.eq.s32.totalorder %s2720_s14, 0  ;;  %p2355_p3 = scmp.lt.s32.totalorder %s2720_s14, 2 }
  0x47   : > { %s3475_s27 = smov (%p41_p13, %s39_s27), 0  ;;  %p2918_p7 = por %p2823_p2, %p53_p6 }
  0x48   : > { %p55_p5 = por %p54_p10, %p53_p6  ;;  %s43_s24 = ssub.s32 %s2716_s13, %s3475_s27 }
  0x49   : > { %s3456_s29 = scalar_select %p2918_p7, 1, 0 }
  0x4a   : > { %s341_s15 = sand.u32 1, %s2708_s11   ;;  %p44_p9 = scmp.eq.s32.totalorder %s43_s24, 0 }
  0x4b   : > { %s2119_s26 = sshll.u32 %s341_s15, 7  ;;  %s2196_s16 = sshll.u32 %s2716_s13, 11 }
  0x4c   : > { %s2927_s22 = scalar_select %p44_p9, %s2708_s11, %s46_s28  }
  0x4d   : > { %s2932_s2 = scalar_lea.hbm %s3429_s0, %s2196_s16  ;;  %s345_s18 = scalar_lea.vmem [#allocation4], %s2119_s26 }
  0x4e   : > { %s352_s8 = sshll.u32 %s345_s18, 4  ;;  %p2936_p2 = pnand %p2355_p3, %p55_p5  ;;  %s2940_s8 = int_to_ptr.vmem [resolvable:$true] %s352_s8 }
  0x4f   : > { %s2942_s20 = scalar_lea.sflag [#allocation5], %s341_s15  ;;  %s2604_s28 = scalar_lea.hbm %s2932_s2, 2048 }
  0x50   : > { %p2605_p11 = scmp.ne.s32.totalorder %s2932_s2, %s2604_s28  ;;  %p2606_p12 = pneg %p2936_p2 }
  0x51   : > { %s2609_s16 = scalar_lea.hbm %s3429_s0, 4096  ;;  %p2610_p4 = scmp.lt.u32.totalorder %s2932_s2, %s3429_s0 }
  0x52   : > { %p2607_p0 = pnand %p2606_p12, %p2605_p11  ;;  %p2611_p13 = scmp.lt.u32.totalorder %s2609_s16, %s2604_s28 }
  0x53   : > { %p2613_p10 = scmp.lt.u32.totalorder %s2604_s28, %s2932_s2 }
  0x54   : > { %p2608_p1 = pneg %p2607_p0  ;;  %p2612_p6 = por %p2611_p13, %p2610_p4 }
  0x56   : > { %p2614_p3 = por %p2613_p10, %p2612_p6 }
  0x58   : > { %p2615_p5 = pnand %p2614_p3, %p2608_p1 }
  0x5a   : > { %2618 = shalt.err (!%p2615_p5)
}
  0x5b   : > { %s2619_s15 = scalar_lea.vmem %s2940_s8, 2048  ;;  %s2728_s18 = smov [#allocation4]  }
  0x5c   : > { %p2620_p9 = scmp.ne.s32.totalorder %s2940_s8, %s2619_s15  ;;  %s2624_s24 = sshll.u32 %s2728_s18, 4  ;;  %s2625_s24 = int_to_ptr.vmem [resolvable:$false] %s2624_s24 }
  0x5d   : > { %s2626_s26 = scalar_lea.vmem %s2625_s24, 4096  ;;  %p2627_p7 = scmp.lt.s32.totalorder %s2940_s8, %s2625_s24 }
  0x5e   : > { %p2622_p11 = pnand %p2620_p9, %p2606_p12  ;;  %p2628_p4 = scmp.lt.s32.totalorder %s2626_s26, %s2619_s15 }
  0x60   : > { %p2623_p0 = pneg %p2622_p11  ;;  %p2629_p13 = por %p2628_p4, %p2627_p7 }
  0x62   : > { %p2630_p6 = pnand %p2629_p13, %p2623_p0 }
  0x64   : > { %2633 = shalt.err (!%p2630_p6)
}
  0x65   : > { %s2729_s28 = smov 128   ;;  %s2730_s16 = smov 8  }
  0x66   : > { %2348 = dma.hbm_to_vmem [thread:$0]  (!%p2936_p2), %s2932_s2, 2048, %s2940_s8, %s2942_s20, %s2729_s28, %s2729_s28, %s2730_s16  }
  0x67   : > { %370 = sbr.rel (%p2839_p8) target bundleno = 971 (0x3cb), region = 52  ;;  %s2973_s25 = sand.u32 (!%p2839_p8), 1, %s2704_s10  }
  0x68   : > { %s2123_s23 = sshll.u32 (!%p2839_p8), %s2973_s25, 7  ;;  %s373_s15 = scalar_lea.sflag (!%p2839_p8), [#allocation5], %s2973_s25 }
  0x69   : > { %s2979_s18 = scalar_lea.vmem (!%p2839_p8), [#allocation4], %s2123_s23  ;;  %p3458_p7 = scmp.ne.s32.totalorder (!%p2839_p8), %s3451_s19, 0 }
  0x6e   : > { %2687 = dma.done.wait (%p3458_p7), %s373_s15, 2048  }
  0x6f   : > { %2689 = vsyncadd (%p3458_p7), %s373_s15, 4294965248  ;;  %p3459_p2 = scmp.ne.s32.totalorder %s3449_s17, 0 }
  0x71   : > { %2691 = dma.done.wait (%p3459_p2), [#allocation8], 8192  }
  0x72   : > { %2693 = vsyncadd (%p3459_p2), [#allocation8], 4294959104  ;;  %p426_p8 = scmp.lt.s32.totalorder %s2712_s12, 1  ;;  %vm810_vm0 = vcmask 1040384   ;;  %v444_v0 = vld [vmem:[%s2979_s18] sm:$0xff]  ;;  %v459_v1 = vld [vmem:[%s2979_s18 + $0x78] sm:$0xff] }
  0x73   : > { %476 = vadd.xlane.f32.xlu0 %v444_v0  ;;  %506 = vadd.xlane.f32.xlu1 %v459_v1  ;;  %v445_v3 = vld [vmem:[%s2979_s18 + $0x8] sm:$0xff]  ;;  %v446_v5 = vld [vmem:[%s2979_s18 + $0x10] sm:$0xff]  ;;  %v447_v6 = vld [vmem:[%s2979_s18 + $0x18] sm:$0xff]  ;;  %p826_p12 = scmp.eq.s32.totalorder %s2712_s12, 0  ;;  %s3462_s17 = sld [smem:[#allocation16_spill]] }
  0x74   : > { %s2991_s21 = scalar_select %p426_p8, %s2712_s12, 1  ;;  %v448_v7 = vld [vmem:[%s2979_s18 + $0x20] sm:$0xff]  ;;  %v449_v8 = vld [vmem:[%s2979_s18 + $0x28] sm:$0xff]  ;;  %v450_v9 = vld [vmem:[%s2979_s18 + $0x30] sm:$0xff]  ;;  %vm837_vm3 = vsmask.f32 256 }
  0x75   : > { %v3007_v10 = vld [vmem:[%s2979_s18 + $0x38] sm:$0xff]  ;;  %v3010_v11 = vld [vmem:[%s2979_s18 + $0x40] sm:$0xff]  ;;  %v3013_v12 = vld [vmem:[%s2979_s18 + $0x48] sm:$0xff]  ;;  %s3145_s16 = scalar_select %p826_p12, 1, 0 }
  0x76   : > { %s428_s8 = scalar_lea.vmem %s3430_s1, %s2991_s21  ;;  %v3017_v13 = vld [vmem:[%s2979_s18 + $0x50] sm:$0xff]  ;;  %v3020_v14 = vld [vmem:[%s2979_s18 + $0x58] sm:$0xff]  ;;  %v3025_v15 = vld [vmem:[%s2979_s18 + $0x60] sm:$0xff]  ;;  %s434_s2 = scalar_lea.vmem %s3438_s9, %s2991_s21 }
  0x77   : > { %v809_v2 = vld [vmem:[%s428_s8] sm:$0x1]  ;;  %478 = vadd.xlane.f32.xlu0 %v445_v3  ;;  %v3028_v16 = vld [vmem:[%s2979_s18 + $0x68] sm:$0xff]  ;;  %v3033_v17 = vld [vmem:[%s2979_s18 + $0x70] sm:$0xff]  ;;  %s3340_s30 = scalar_lea.vmem [#allocation10], %s2123_s23  ;;  %s2197_s23 = sshll.u32 %s2712_s12, 11 }
  0x78   : > { %v811_v4 = vsel %vm810_vm0, %v809_v2, 0.0  ;;  %vm838_vm4 = vmand %vm810_vm0, %vm837_vm3  ;;  %s1978_s20 = sshll.u32 %s3340_s30, 4  ;;  %s3463_s28 = sld [smem:[#allocation17_spill]]  ;;  %s3377_s20 = int_to_ptr.vmem [resolvable:$true] %s1978_s20 }
  0x79   : > { %812 = vadd.xlane.f32.xlu1 %v811_v4  ;;  %s1962_s15 = scalar_lea.sflag [#allocation6], %s2973_s25  ;;  %s2634_s12 = scalar_lea.vmem %s3377_s20, 2048 }
  0x7a   : > { %p2635_p1 = scmp.ne.s32.totalorder %s3377_s20, %s2634_s12  ;;  %p3464_p10 = scmp.ne.s32.totalorder %s3456_s29, 0 }
  0x7b   : > { %480 = vadd.xlane.f32.xlu0 %v446_v5  ;;  %s2732_s19 = smov [#allocation10]  }
  0x7c   : > { %p2636_p3 = pnand %p2635_p1, %p3464_p10 }
  0x7d   : > { %482 = vadd.xlane.f32.xlu1 %v447_v6 }
  0x7e   : > { %p2637_p5 = pneg %p2636_p3 }
  0x7f   : > { %484 = vadd.xlane.f32.xlu0 %v448_v7 }
  0x81   : > { %486 = vadd.xlane.f32.xlu1 %v449_v8 }
  0x83   : > { %488 = vadd.xlane.f32.xlu0 %v450_v9 }
  0x85   : > { %490 = vadd.xlane.f32.xlu1 %v3007_v10 }
  0x87   : > { %492 = vadd.xlane.f32.xlu0 %v3010_v11 }
  0x89   : > { %494 = vadd.xlane.f32.xlu1 %v3013_v12 }
  0x8b   : > { %496 = vadd.xlane.f32.xlu0 %v3017_v13 }
  0x8d   : > { %498 = vadd.xlane.f32.xlu1 %v3020_v14 }
  0x8f   : > { %500 = vadd.xlane.f32.xlu0 %v3025_v15 }
  0x91   : > { %502 = vadd.xlane.f32.xlu1 %v3028_v16 }
  0x93   : > { %504 = vadd.xlane.f32.xlu0 %v3033_v17 }
 0x100   : > { %v477_v18 = vpop.xlane.xlu0 %476  ;;  %v507_v19 = vpop.xlane.xlu1 %506 }
 0x101   : > { %v509_v20 = vmul.f32 0.0078125, %v477_v18  ;;  %v524_v21 = vmul.f32 0.0078125, %v507_v19 }
 0x103   : > { %v3038_v22 = vsub.f32 %v444_v0, %v509_v20  ;;  %v3040_v23 = vsub.f32 %v459_v1, %v524_v21 }
 0x104   : > { %v479_v24 = vpop.xlane.xlu0 %478 }
 0x105   : > { %v510_v26 = vmul.f32 0.0078125, %v479_v24  ;;  %v541_v28 = vmul.f32 %v3038_v22, %v3038_v22  ;;  %v556_v31 = vmul.f32 %v3040_v23, %v3040_v23 }
 0x106   : > { %v813_v25 = vpop.xlane.xlu1 %812 }
 0x107   : > { %v814_v27 = vmul.f32 0.0078125, %v813_v25  ;;  %v3044_v29 = vsub.f32 %v445_v3, %v510_v26  ;;  %557 = vadd.xlane.f32.xlu1 %v541_v28  ;;  %v2418_v26 = vld [vmem:[#allocation7 + $0x4] ss:$16 sps:$4 sm:$0xff]   ;;  %v2422_v28 = vld [vmem:[#allocation7] ss:$16 sps:$4 sm:$0xff]  }
 0x108   : > { %v481_v32 = vpop.xlane.xlu0 %480  ;;  %1042 = vmatprep.subr.bf16.mxu0 %v2418_v26 }
 0x109   : > { %v3046_v30 = vsub.f32 %v809_v2, %v814_v27  ;;  %v511_v34 = vmul.f32 0.0078125, %v481_v32  ;;  %v542_v35 = vmul.f32 %v3044_v29, %v3044_v29  ;;  %v2420_v27 = vld [vmem:[#allocation7 + $0xc] ss:$16 sps:$4 sm:$0xff]   ;;  %1043 = vmatpush1.bf16.msra.mxu0 %v2422_v28 }
 0x10a   : > { %v483_v33 = vpop.xlane.xlu1 %482  ;;  %1155 = vmatprep.subr.bf16.mxu1 %v2420_v27  ;;  %v2426_v32 = vld [vmem:[#allocation7 + $0x2c] ss:$16 sps:$4 sm:$0xff]  }
 0x10b   : > { %v512_v36 = vmul.f32 0.0078125, %v483_v33  ;;  %v816_v37 = vmul.f32 %v3046_v30, %v3046_v30  ;;  %v3054_v38 = vsub.f32 %v446_v5, %v511_v34  ;;  %587 = vadd.xlane.f32.xlu1 %v556_v31  ;;  %559 = vadd.xlane.f32.xlu0 %v542_v35  ;;  %v2423_v31 = vld [vmem:[#allocation7 + $0x8] ss:$16 sps:$4 sm:$0xff]   ;;  %v2428_v33 = vld [vmem:[#allocation7 + $0x20] ss:$16 sps:$4 sm:$0xff]  }
 0x10c   : > { %v485_v40 = vpop.xlane.xlu0 %484  ;;  %1156 = vmatpush1.bf16.msra.mxu1 %v2423_v31  ;;  %v2429_v34 = vld [vmem:[#allocation7 + $0x28] ss:$16 sps:$4 sm:$0xff]   ;;  %v2430_v35 = vld [vmem:[#allocation7 + $0x44] ss:$16 sps:$4 sm:$0xff]  }
 0x10d   : > { %v3056_v39 = vsub.f32 %v447_v6, %v512_v36  ;;  %v817_v41 = vsel %vm810_vm0, %v816_v37, 0.0  ;;  %v513_v43 = vmul.f32 0.0078125, %v485_v40  ;;  %v543_v44 = vmul.f32 %v3054_v38, %v3054_v38  ;;  %1157 = vmatprep.subr.bf16.mxu1 %v2426_v32  ;;  %v2432_v36 = vld [vmem:[#allocation7 + $0x4c] ss:$16 sps:$4 sm:$0xff]   ;;  %v2434_v37 = vld [vmem:[#allocation7 + $0x40] ss:$16 sps:$4 sm:$0xff]  }
 0x10e   : > { %v487_v42 = vpop.xlane.xlu1 %486  ;;  %v2435_v40 = vld [vmem:[#allocation7 + $0x48] ss:$16 sps:$4 sm:$0xff]  }
 0x10f   : > { %v514_v45 = vmul.f32 0.0078125, %v487_v42  ;;  %v3061_v46 = vsub.f32 %v448_v7, %v513_v43  ;;  %818 = vadd.xlane.f32.xlu0 %v817_v41  ;;  %561 = vadd.xlane.f32.xlu1 %v543_v44  ;;  %v544_v48 = vmul.f32 %v3056_v39, %v3056_v39  ;;  %v2436_v41 = vld [vmem:[#allocation7 + $0x64] ss:$16 sps:$4 sm:$0xff]   ;;  %v2438_v42 = vld [vmem:[#allocation7 + $0x6c] ss:$16 sps:$4 sm:$0xff]  }
 0x110   : > { %v489_v49 = vpop.xlane.xlu0 %488  ;;  %1158 = vmatpush1.bf16.msra.mxu1 %v2429_v34  ;;  %v2440_v43 = vld [vmem:[#allocation7 + $0x60] ss:$16 sps:$4 sm:$0xff]   ;;  %v2441_v44 = vld [vmem:[#allocation7 + $0x68] ss:$16 sps:$4 sm:$0xff]  }
 0x111   : > { %v3063_v47 = vsub.f32 %v449_v8, %v514_v45  ;;  %v515_v51 = vmul.f32 0.0078125, %v489_v49  ;;  %v545_v52 = vmul.f32 %v3061_v46, %v3061_v46  ;;  %1159 = vmatprep.subr.bf16.mxu1 %v2432_v36  ;;  %v2442_v45 = vld [vmem:[#allocation7 + $0x84] ss:$16 sps:$4 sm:$0xff]   ;;  %v2446_v49 = vld [vmem:[#allocation7 + $0x80] ss:$16 sps:$4 sm:$0xff]  }
 0x112   : > { %v491_v50 = vpop.xlane.xlu1 %490  ;;  %v3129_v36 = vld [vmem:[%s3433_s4] sm:$0x1] }
 0x113   : > { %v516_v53 = vmul.f32 0.0078125, %v491_v50  ;;  %v3069_v54 = vsub.f32 %v450_v9, %v515_v51  ;;  %563 = vadd.xlane.f32.xlu0 %v544_v48  ;;  %565 = vadd.xlane.f32.xlu1 %v545_v52  ;;  %v546_v56 = vmul.f32 %v3063_v47, %v3063_v47  ;;  %v2444_v48 = vld [vmem:[#allocation7 + $0x8c] ss:$16 sps:$4 sm:$0xff]   ;;  %v2447_v50 = vld [vmem:[#allocation7 + $0x88] ss:$16 sps:$4 sm:$0xff]  }
 0x114   : > { %v493_v57 = vpop.xlane.xlu0 %492  ;;  %1160 = vmatpush1.bf16.msra.mxu1 %v2435_v40  ;;  %v2448_v51 = vld [vmem:[#allocation7 + $0xa4] ss:$16 sps:$4 sm:$0xff]   ;;  %v2450_v52 = vld [vmem:[#allocation7 + $0xac] ss:$16 sps:$4 sm:$0xff]  }
 0x115   : > { %v3072_v55 = vsub.f32 %v3007_v10, %v516_v53  ;;  %v517_v59 = vmul.f32 0.0078125, %v493_v57  ;;  %v547_v60 = vmul.f32 %v3069_v54, %v3069_v54  ;;  %1161 = vmatprep.subr.bf16.mxu1 %v2438_v42  ;;  %v2452_v53 = vld [vmem:[#allocation7 + $0xa0] ss:$16 sps:$4 sm:$0xff]   ;;  %v2454_v57 = vld [vmem:[#allocation7 + $0xc4] ss:$16 sps:$4 sm:$0xff]  }
 0x116   : > { %v495_v58 = vpop.xlane.xlu1 %494 }
 0x117   : > { %v518_v61 = vmul.f32 0.0078125, %v495_v58  ;;  %v3079_v62 = vsub.f32 %v3010_v11, %v517_v59  ;;  %567 = vadd.xlane.f32.xlu0 %v546_v56  ;;  %569 = vadd.xlane.f32.xlu1 %v547_v60  ;;  %v548_v0 = vmul.f32 %v3072_v55, %v3072_v55  ;;  %v2453_v56 = vld [vmem:[#allocation7 + $0xa8] ss:$16 sps:$4 sm:$0xff]   ;;  %v2456_v58 = vld [vmem:[#allocation7 + $0xcc] ss:$16 sps:$4 sm:$0xff]  }
 0x118   : > { %v497_v1 = vpop.xlane.xlu0 %496  ;;  %1162 = vmatpush1.bf16.msra.mxu1 %v2441_v44  ;;  %v2458_v59 = vld [vmem:[#allocation7 + $0xc0] ss:$16 sps:$4 sm:$0xff]   ;;  %v2459_v60 = vld [vmem:[#allocation7 + $0xc8] ss:$16 sps:$4 sm:$0xff]  }
 0x119   : > { %v3082_v63 = vsub.f32 %v3013_v12, %v518_v61  ;;  %v519_v3 = vmul.f32 0.0078125, %v497_v1  ;;  %v549_v4 = vmul.f32 %v3079_v62, %v3079_v62  ;;  %1163 = vmatprep.subr.bf16.mxu1 %v2444_v48  ;;  %v2460_v61 = vld [vmem:[#allocation7 + $0xe4] ss:$16 sps:$4 sm:$0xff]   ;;  %v2464_v1 = vld [vmem:[#allocation7 + $0xe0] ss:$16 sps:$4 sm:$0xff]  }
 0x11a   : > { %v499_v2 = vpop.xlane.xlu1 %498 }
 0x11b   : > { %v520_v5 = vmul.f32 0.0078125, %v499_v2  ;;  %v3089_v6 = vsub.f32 %v3017_v13, %v519_v3  ;;  %571 = vadd.xlane.f32.xlu0 %v548_v0  ;;  %573 = vadd.xlane.f32.xlu1 %v549_v4  ;;  %v550_v8 = vmul.f32 %v3082_v63, %v3082_v63  ;;  %v2462_v0 = vld [vmem:[#allocation7 + $0xec] ss:$16 sps:$4 sm:$0xff]   ;;  %v2465_v2 = vld [vmem:[#allocation7 + $0xe8] ss:$16 sps:$4 sm:$0xff]   ;;  %v2731_v3 = vmov 0  }
 0x11c   : > { %v501_v9 = vpop.xlane.xlu0 %500  ;;  %1164 = vmatpush1.bf16.msra.mxu1 %v2447_v50  ;;  %1074 = vmatprep.mubr.bf16.mxu0 %v2731_v3  ;;  %v2466_v4 = vld [vmem:[#allocation9 + $0x40] sm:$0xff]  }
 0x11d   : > { %v3092_v7 = vsub.f32 %v3020_v14, %v520_v5  ;;  %v521_v11 = vmul.f32 0.0078125, %v501_v9  ;;  %v551_v12 = vmul.f32 %v3089_v6, %v3089_v6  ;;  %1165 = vmatprep.subr.bf16.mxu1 %v2450_v52  ;;  %1187 = vmatprep.mubr.bf16.mxu1 %v2731_v3  ;;  %v2467_v5 = vld [vmem:[#allocation9 + $0xc0] sm:$0xff]  }
 0x11e   : > { %v503_v10 = vpop.xlane.xlu1 %502 }
 0x11f   : > { %v522_v18 = vmul.f32 0.0078125, %v503_v10  ;;  %v3099_v19 = vsub.f32 %v3025_v15, %v521_v11  ;;  %575 = vadd.xlane.f32.xlu0 %v550_v8  ;;  %577 = vadd.xlane.f32.xlu1 %v551_v12  ;;  %v552_v14 = vmul.f32 %v3092_v7, %v3092_v7  ;;  %v654_v10 = vlaneseq }
 0x120   : > { %v505_v20 = vpop.xlane.xlu0 %504  ;;  %1166 = vmatpush1.bf16.msra.mxu1 %v2453_v56 }
 0x121   : > { %v3102_v13 = vsub.f32 %v3028_v16, %v522_v18  ;;  %v523_v21 = vmul.f32 0.0078125, %v505_v20  ;;  %v553_v24 = vmul.f32 %v3099_v19, %v3099_v19  ;;  %1167 = vmatprep.subr.bf16.mxu1 %v2456_v58 }
 0x123   : > { %v3109_v25 = vsub.f32 %v3033_v17, %v523_v21  ;;  %579 = vadd.xlane.f32.xlu0 %v552_v14  ;;  %581 = vadd.xlane.f32.xlu1 %v553_v24  ;;  %v554_v15 = vmul.f32 %v3102_v13, %v3102_v13  ;;  %v2424_v17 = vld [vmem:[#allocation7 + $0x24] ss:$16 sps:$4 sm:$0xff]   ;;  %v3117_v21 = vshrl.u32 %v654_v10, 7 }
 0x124   : > { %1044 = vmatprep.subr.bf16.mxu0 %v2424_v17  ;;  %1168 = vmatpush1.bf16.msra.mxu1 %v2459_v60  ;;  %v3123_v17 = vld [vmem:[%s3432_s3] sm:$0x1] }
 0x125   : > { %v555_v16 = vmul.f32 %v3109_v25, %v3109_v25  ;;  %1045 = vmatpush1.bf16.msra.mxu0 %v2428_v33  ;;  %1169 = vmatprep.subr.bf16.mxu1 %v2462_v0  ;;  %v656_v31 = vsub.s32 0, %v3117_v21  ;;  %vm716_vm1 = vcmp.lt.s32.totalorder %v3117_v21, 1  ;;  %v2493_v21 = vld [vmem:[#allocation9 + $0xb0] sm:$0xff]  }
 0x126   : > { %1046 = vmatprep.subr.bf16.mxu0 %v2430_v35 }
 0x127   : > { %583 = vadd.xlane.f32.xlu0 %v554_v15  ;;  %585 = vadd.xlane.f32.xlu1 %v555_v16 }
 0x128   : > { %1170 = vmatpush1.bf16.msra.mxu1 %v2465_v2 }
 0x129   : > { %1047 = vmatpush1.bf16.msra.mxu0 %v2434_v37  ;;  %2262 = vmatprep.subr.bf16.mxu1 %v2467_v5 }
 0x12a   : > { %1048 = vmatprep.subr.bf16.mxu0 %v2436_v41  ;;  %v3132_v41 = vrot.slane %v3123_v17, %v656_v31 }
 0x12d   : > { %1049 = vmatpush1.bf16.msra.mxu0 %v2440_v43  ;;  %v3137_v43 = vld [vmem:[%s3434_s5] sm:$0x1] }
 0x12e   : > { %1050 = vmatprep.subr.bf16.mxu0 %v2442_v45  ;;  %v443_v56 = vsub.f32 1.0, %v3137_v43 }
 0x130   : > { %v3157_v10 = vrot.slane %v443_v56, %v656_v31 }
 0x131   : > { %1051 = vmatpush1.bf16.msra.mxu0 %v2446_v49  ;;  %v3141_v49 = vrot.slane %v3129_v36, %v656_v31 }
 0x132   : > { %1052 = vmatprep.subr.bf16.mxu0 %v2448_v51 }
 0x135   : > { %1053 = vmatpush1.bf16.msra.mxu0 %v2452_v53 }
 0x136   : > { %1054 = vmatprep.subr.bf16.mxu0 %v2454_v57 }
 0x139   : > { %1055 = vmatpush1.bf16.msra.mxu0 %v2458_v59 }
 0x13a   : > { %1056 = vmatprep.subr.bf16.mxu0 %v2460_v61 }
 0x13d   : > { %1057 = vmatpush1.bf16.msra.mxu0 %v2464_v1  ;;  %v829_v1 = vstv %s3145_s16  ;;  %s3375_s16 = scalar_lea.hbm %s3463_s28, %s2197_s23 }
 0x13e   : > { %2198 = vmatprep.subr.bf16.mxu0 %v2466_v4  ;;  %vm3173_vm2 = vcmp.eq.s32.totalorder %v829_v1, 1 }
 0x194   : > { %v558_v8 = vpop.xlane.xlu1 %557 }
 0x195   : > { %v589_v9 = vmul.f32 0.0078125, %v558_v8 }
 0x197   : > { %v605_v11 = vadd.f32 1e-05, %v589_v9 }
 0x198   : > { %v588_v12 = vpop.xlane.xlu1 %587  ;;  %v560_v18 = vpop.xlane.xlu0 %559 }
 0x199   : > { %2498 = vrsqrt.f32 %v605_v11  ;;  %v604_v14 = vmul.f32 0.0078125, %v588_v12  ;;  %v590_v20 = vmul.f32 0.0078125, %v560_v18  ;;  %v3160_v11 = vrot.slane %v3137_v43, %v656_v31 }
 0x19b   : > { %v620_v24 = vadd.f32 1e-05, %v604_v14  ;;  %v606_v15 = vadd.f32 1e-05, %v590_v20 }
 0x19c   : > { %v562_v16 = vpop.xlane.xlu1 %561  ;;  %v819_v26 = vpop.xlane.xlu0 %818 }
 0x19d   : > { %2500 = vrsqrt.f32 %v620_v24  ;;  %v591_v27 = vmul.f32 0.0078125, %v562_v16  ;;  %v820_v28 = vmul.f32 0.0078125, %v819_v26 }
 0x19e   : > { %2502 = vrsqrt.f32 %v606_v15 }
 0x19f   : > { %v607_v32 = vadd.f32 1e-05, %v591_v27  ;;  %v821_v33 = vadd.f32 1e-05, %v820_v28 }
 0x1a0   : > { %v566_v34 = vpop.xlane.xlu1 %565  ;;  %v564_v35 = vpop.xlane.xlu0 %563 }
 0x1a1   : > { %2504 = vrsqrt.f32 %v607_v32  ;;  %v593_v37 = vmul.f32 0.0078125, %v566_v34  ;;  %v592_v40 = vmul.f32 0.0078125, %v564_v35 }
 0x1a2   : > { %2506 = vrsqrt.f32 %v821_v33 }
 0x1a3   : > { %v2499_v42 = vpop.eup %2498  ;;  %v609_v44 = vadd.f32 1e-05, %v593_v37  ;;  %v608_v45 = vadd.f32 1e-05, %v592_v40 }
 0x1a4   : > { %v637_v48 = vmul.f32 %v2499_v42, %v3038_v22  ;;  %v570_v50 = vpop.xlane.xlu1 %569  ;;  %v568_v51 = vpop.xlane.xlu0 %567 }
 0x1a5   : > { %2508 = vrsqrt.f32 %v609_v44  ;;  %v595_v52 = vmul.f32 0.0078125, %v570_v50  ;;  %v594_v53 = vmul.f32 0.0078125, %v568_v51  ;;  %v827_v50 = vld [vmem:[%s3462_s17] sm:$0x1] }
 0x1a6   : > { %v659_v57 = vmul.f32 %v3132_v41, %v637_v48  ;;  %2510 = vrsqrt.f32 %v608_v45 }
 0x1a7   : > { %v2501_v58 = vpop.eup %2500  ;;  %v611_v59 = vadd.f32 1e-05, %v595_v52  ;;  %v610_v22 = vadd.f32 1e-05, %v594_v53 }
 0x1a8   : > { %v2503_v60 = vpop.eup %2502  ;;  %v3150_v61 = vadd.f32 %v3141_v49, %v659_v57  ;;  %v652_v0 = vmul.f32 %v2501_v58, %v3040_v23  ;;  %v574_v2 = vpop.xlane.xlu1 %573 }
 0x1a9   : > { %v572_v4 = vpop.xlane.xlu0 %571  ;;  %v638_v5 = vmul.f32 %v2503_v60, %v3044_v29  ;;  %2512 = vrsqrt.f32 %v611_v59  ;;  %v597_v8 = vmul.f32 0.0078125, %v574_v2 }
 0x1aa   : > { %v596_v9 = vmul.f32 0.0078125, %v572_v4  ;;  %v674_v12 = vmul.f32 %v3132_v41, %v652_v0  ;;  %2514 = vrsqrt.f32 %v610_v22  ;;  %v698_v27 = vrot.slane %v3150_v61, 7 }
 0x1ab   : > { %v2505_v18 = vpop.eup %2504  ;;  %v660_v23 = vmul.f32 %v3132_v41, %v638_v5  ;;  %v613_v29 = vadd.f32 1e-05, %v597_v8  ;;  %v739_v37 = vmul.f32 %v3157_v10, %v3150_v61 }
 0x1ac   : > { %v612_v14 = vadd.f32 1e-05, %v596_v9  ;;  %v2507_v20 = vpop.eup %2506  ;;  %v3170_v24 = vadd.f32 %v3141_v49, %v674_v12  ;;  %v639_v15 = vmul.f32 %v2505_v18, %v3054_v38  ;;  %v578_v26 = vpop.xlane.xlu1 %577 }
 0x1ad   : > { %v682_v28 = vadd.f32 %v3141_v49, %v660_v23  ;;  %v823_v31 = vmul.f32 %v2507_v20, %v3046_v30  ;;  %2516 = vrsqrt.f32 %v613_v29  ;;  %v576_v32 = vpop.xlane.xlu0 %575  ;;  %v599_v38 = vmul.f32 0.0078125, %v578_v26 }
 0x1ae   : > { %697 = vst [vmem:[%s434_s2 - $0x7] sm:$0x80] %v3170_v24  ;;  %v713_v33 = vrot.slane %v3170_v24, 7  ;;  %v661_v34 = vmul.f32 %v3132_v41, %v639_v15  ;;  %2518 = vrsqrt.f32 %v612_v14  ;;  %v598_v52 = vmul.f32 0.0078125, %v576_v32  ;;  %s2638_s2 = sshll.u32 %s2732_s19, 4  ;;  %s2639_s2 = int_to_ptr.vmem [resolvable:$false] %s2638_s2 }
 0x1af   : > { %v2509_v35 = vpop.eup %2508  ;;  %v699_v40 = vrot.slane %v682_v28, 7  ;;  %v740_v42 = vmul.f32 %v3157_v10, %v682_v28  ;;  %v824_v44 = vmul.f32 %v823_v31, %v3123_v17  ;;  %v615_v0 = vadd.f32 1e-05, %v599_v38  ;;  %s2640_s21 = scalar_lea.vmem %s2639_s2, 4096  ;;  %p2641_p9 = scmp.lt.s32.totalorder %s3377_s20, %s2639_s2 }
 0x1b0   : > { %v2511_v30 = vpop.eup %2510  ;;  %v732_v45 = vsel %vm716_vm1, %v713_v33, %v698_v27  ;;  %v683_v48 = vadd.f32 %v3141_v49, %v661_v34  ;;  %v641_v51 = vmul.f32 %v2509_v35, %v3061_v46  ;;  %v614_v23 = vadd.f32 1e-05, %v598_v52  ;;  %v582_v15 = vpop.xlane.xlu1 %581  ;;  %p2642_p11 = scmp.lt.s32.totalorder %s2640_s21, %s2634_s12 }
 0x1b1   : > { %v731_v53 = vsel %vm716_vm1, %v698_v27, %v699_v40  ;;  %v761_v17 = vmul.f32 %v3160_v11, %v732_v45  ;;  %v825_v57 = vadd.f32 %v824_v44, %v3129_v36  ;;  %v640_v58 = vmul.f32 %v2511_v30, %v3056_v39  ;;  %v580_v45 = vpop.xlane.xlu0 %579 }
 0x1b2   : > { %v762_v59 = vmul.f32 %v3160_v11, %v731_v53  ;;  %v700_v22 = vrot.slane %v683_v48, 7  ;;  %v663_v60 = vmul.f32 %v3132_v41, %v641_v51  ;;  %v832_v29 = vmul.f32 %v3150_v61, %v443_v56  ;;  %p2643_p0 = por %p2642_p11, %p2641_p9 }
 0x1b3   : > { %v2513_v1 = vpop.eup %2512  ;;  %v777_v2 = vadd.f32 %v761_v17, %v739_v37  ;;  %v831_v46 = vsel %vm3173_vm2, %v827_v50, %v825_v57  ;;  %v662_v4 = vmul.f32 %v3132_v41, %v640_v58  ;;  %2520 = vrsqrt.f32 %v615_v0 }
 0x1b4   : > { %v778_v5 = vadd.f32 %v762_v59, %v740_v42  ;;  %v730_v8 = vsel %vm716_vm1, %v699_v40, %v700_v22  ;;  %v833_v36 = vmul.f32 %v831_v46, %v3137_v43  ;;  %v685_v39 = vadd.f32 %v3141_v49, %v663_v60  ;;  %v2515_v9 = vpop.eup %2514  ;;  %p2644_p4 = pnand %p2643_p0, %p2637_p5 }
 0x1b5   : > { %v684_v12 = vadd.f32 %v3141_v49, %v662_v4  ;;  %v643_v18 = vmul.f32 %v2513_v1, %v3069_v54  ;;  %v741_v26 = vmul.f32 %v3157_v10, %v683_v48  ;;  %v763_v27 = vmul.f32 %v3160_v11, %v730_v8 }
 0x1b6   : > { %v793_v14 = vpack.c.bf16 %v778_v5, %v777_v2  ;;  %v702_v20 = vrot.slane %v685_v39, 7  ;;  %v834_v54 = vadd.f32 %v833_v36, %v832_v29  ;;  %v642_v34 = vmul.f32 %v2515_v9, %v3063_v47 }
 0x1b7   : > { %v2517_v16 = vpop.eup %2516  ;;  %v701_v28 = vrot.slane %v684_v12, 7  ;;  %v665_v31 = vmul.f32 %v3132_v41, %v643_v18  ;;  %2522 = vrsqrt.f32 %v614_v23  ;;  %v742_v37 = vmul.f32 %v3157_v10, %v684_v12 }
 0x1b8   : > { %v2519_v32 = vpop.eup %2518  ;;  %801 = vst [vmem:[#allocation3] sm:$0xff] %v793_v14  ;;  %v645_v43 = vmul.f32 %v2517_v16, %v3079_v62  ;;  %v664_v42 = vmul.f32 %v3132_v41, %v642_v34  ;;  %v601_v30 = vmul.f32 0.0078125, %v582_v15  ;;  %v779_v48 = vadd.f32 %v763_v27, %v741_v26 }
 0x1b9   : > { %v728_v56 = vsel %vm716_vm1, %v701_v28, %v702_v20  ;;  %v729_v61 = vsel %vm716_vm1, %v700_v22, %v701_v28  ;;  %v687_v38 = vadd.f32 %v3141_v49, %v665_v31  ;;  %v644_v35 = vmul.f32 %v2519_v32, %v3072_v55  ;;  %v586_v55 = vpop.xlane.xlu1 %585  ;;  %v584_v28 = vpop.xlane.xlu0 %583 }
 0x1ba   : > { %v764_v40 = vmul.f32 %v3160_v11, %v729_v61  ;;  %v667_v47 = vmul.f32 %v3132_v41, %v645_v43  ;;  %v765_v62 = vmul.f32 %v3160_v11, %v728_v56  ;;  %v686_v52 = vadd.f32 %v3141_v49, %v664_v42  ;;  %v2468_v42 = vld [vmem:[#allocation9] sm:$0xff]  }
 0x1bb   : > { %v666_v44 = vmul.f32 %v3132_v41, %v644_v35  ;;  %v704_v51 = vrot.slane %v687_v38, 7  ;;  %v835_v53 = vpack.c.bf16 %v834_v54, %v834_v54  ;;  %v743_v17 = vmul.f32 %v3157_v10, %v685_v39 }
 0x1bc   : > { %v780_v50 = vadd.f32 %v764_v40, %v742_v37  ;;  %v617_v58 = vadd.f32 1e-05, %v601_v30  ;;  %v703_v22 = vrot.slane %v686_v52, 7  ;;  %v689_v60 = vadd.f32 %v3141_v49, %v667_v47  ;;  %v2469_v47 = vld [vmem:[#allocation9 + $0x80] sm:$0xff]   ;;  %v2471_v30 = vld [vmem:[#allocation9 + $0xc8] sm:$0xff]  }
 0x1bd   : > { %v688_v57 = vadd.f32 %v3141_v49, %v666_v44  ;;  %v600_v0 = vmul.f32 0.0078125, %v580_v45  ;;  %v745_v2 = vmul.f32 %v3157_v10, %v687_v38  ;;  %v781_v46 = vadd.f32 %v765_v62, %v743_v17  ;;  %v2521_v8 = vpop.eup %2520  ;;  %v2470_v44 = vld [vmem:[#allocation9 + $0x48] sm:$0xff]  }
 0x1be   : > { %v3237_v59 = vpack.c.bf16 %v780_v50, %v779_v48  ;;  %v603_v5 = vmul.f32 0.0078125, %v586_v55  ;;  %v726_v39 = vsel %vm716_vm1, %v703_v22, %v704_v51  ;;  %v727_v9 = vsel %vm716_vm1, %v702_v20, %v703_v22  ;;  %v2473_v17 = vld [vmem:[#allocation9 + $0x88] sm:$0xff]  }
 0x1bf   : > { %v839_v1 = vld [vmem:[#allocation3] sm:$0x1]  ;;  %v705_v4 = vrot.slane %v688_v57, 7  ;;  %2524 = vrsqrt.f32 %v617_v58  ;;  %v744_v12 = vmul.f32 %v3157_v10, %v686_v52  ;;  %v766_v18 = vmul.f32 %v3160_v11, %v727_v9 }
 0x1c0   : > { %v840_v36 = vsel %vm838_vm4, %v835_v53, %v839_v1  ;;  %v767_v23 = vmul.f32 %v3160_v11, %v726_v39  ;;  %v706_v15 = vrot.slane %v689_v60, 7  ;;  %v746_v16 = vmul.f32 %v3157_v10, %v688_v57  ;;  %v2472_v53 = vld [vmem:[#allocation9 + $0x8] sm:$0xff]   ;;  %v2475_v1 = vld [vmem:[#allocation9 + $0xd0] sm:$0xff]  }
 0x1c1   : > { %841 = vst [vmem:[#allocation3] sm:$0x1] %v840_v36  ;;  %v725_v29 = vsel %vm716_vm1, %v704_v51, %v705_v4  ;;  %v2523_v14 = vpop.eup %2522  ;;  %v616_v27 = vadd.f32 1e-05, %v600_v0  ;;  %v782_v20 = vadd.f32 %v766_v18, %v744_v12  ;;  %v647_v31 = vmul.f32 %v2521_v8, %v3089_v6  ;;  %v2474_v0 = vld [vmem:[#allocation9 + $0x50] sm:$0xff]  }
 0x1c2   : > { %v768_v26 = vmul.f32 %v3160_v11, %v725_v29  ;;  %v646_v32 = vmul.f32 %v2523_v14, %v3082_v63  ;;  %v619_v54 = vadd.f32 1e-05, %v603_v5  ;;  %v783_v34 = vadd.f32 %v767_v23, %v745_v2  ;;  %v2477_v39 = vld [vmem:[#allocation9 + $0x90] sm:$0xff]   ;;  %v2478_v23 = vld [vmem:[#allocation9 + $0x58] sm:$0xff]  }
 0x1c3   : > { %2526 = vrsqrt.f32 %v616_v27  ;;  %v3254_v56 = vpack.c.bf16 %v782_v20, %v781_v46  ;;  %v602_v38 = vmul.f32 0.0078125, %v584_v28  ;;  %v724_v37 = vsel %vm716_vm1, %v705_v4, %v706_v15  ;;  %v2479_v29 = vld [vmem:[#allocation9 + $0xd8] sm:$0xff]  }
 0x1c4   : > { %v784_v43 = vadd.f32 %v768_v26, %v746_v16  ;;  %v668_v61 = vmul.f32 %v3132_v41, %v646_v32  ;;  %2528 = vrsqrt.f32 %v619_v54  ;;  %v669_v40 = vmul.f32 %v3132_v41, %v647_v31  ;;  %v2480_v26 = vld [vmem:[#allocation9 + $0x18] sm:$0xff]   ;;  %v2482_v31 = vld [vmem:[#allocation9 + $0x60] sm:$0xff]  }
 0x1c5   : > { %v618_v63 = vadd.f32 1e-05, %v602_v38  ;;  %v769_v50 = vmul.f32 %v3160_v11, %v724_v37  ;;  %v747_v57 = vmul.f32 %v3157_v10, %v689_v60  ;;  %v2476_v60 = vld [vmem:[#allocation9 + $0x10] sm:$0xff]   ;;  %v2481_v27 = vld [vmem:[#allocation9 + $0x98] sm:$0xff]  }
 0x1c6   : > { %v3257_v35 = vpack.c.bf16 %v784_v43, %v783_v34  ;;  %v690_v6 = vadd.f32 %v3141_v49, %v668_v61  ;;  %v691_v51 = vadd.f32 %v3141_v49, %v669_v40  ;;  %v2483_v40 = vld [vmem:[#allocation9 + $0xe0] sm:$0xff]  }
 0x1c7   : > { %2530 = vrsqrt.f32 %v618_v63  ;;  %v785_v4 = vadd.f32 %v769_v50, %v747_v57  ;;  %v2490_v57 = vld [vmem:[#allocation9 + $0x70] sm:$0xff]  }
 0x1c8   : > { %v842_v62 = vld [vmem:[#allocation3] sm:$0xff]  ;;  %v707_v45 = vrot.slane %v690_v6, 7  ;;  %v748_v58 = vmul.f32 %v3157_v10, %v690_v6  ;;  %v708_v8 = vrot.slane %v691_v51, 7  ;;  %v749_v61 = vmul.f32 %v3157_v10, %v691_v51 }
 0x1c9   : > { %1075 = vmatmul.mubr.bf16.vlgmr.msra.gmra.mrb[0].mxu0 %v842_v62  ;;  %1188 = vmatmul.mubr.bf16.vlgmr.msra.gmra.mrb[0].mxu1 %v842_v62  ;;  %v2525_v48 = vpop.eup %2524  ;;  %v2486_v62 = vld [vmem:[#allocation9 + $0x68] sm:$0xff]  }
 0x1ca   : > { %1084 = vmatprep.mubr.bf16.mxu0 %v2731_v3  ;;  %1197 = vmatprep.mubr.bf16.mxu1 %v2731_v3  ;;  %v723_v52 = vsel %vm716_vm1, %v706_v15, %v707_v45  ;;  %v649_v55 = vmul.f32 %v2525_v48, %v3099_v19 }
 0x1cb   : > { %2199 = vmatpush3.bf16.msra.mxu0 %v2468_v42  ;;  %2263 = vmatpush3.bf16.msra.mxu1 %v2469_v47  ;;  %v770_v22 = vmul.f32 %v3160_v11, %v723_v52  ;;  %v2485_v47 = vld [vmem:[#allocation9 + $0xa0] sm:$0xff]  }
 0x1cc   : > { %2200 = vmatprep.subr.bf16.mxu0 %v2470_v44  ;;  %2264 = vmatprep.subr.bf16.mxu1 %v2471_v30  ;;  %v671_v2 = vmul.f32 %v3132_v41, %v649_v55  ;;  %v2487_v30 = vld [vmem:[#allocation9 + $0xe8] sm:$0xff]  }
 0x1cd   : > { %v2527_v46 = vpop.eup %2526  ;;  %v786_v5 = vadd.f32 %v770_v22, %v748_v58 }
 0x1ce   : > { %v2529_v19 = vpop.eup %2528  ;;  %v648_v36 = vmul.f32 %v2527_v46, %v3092_v7  ;;  %v3278_v12 = vadd.f32 %v3141_v49, %v671_v2 }
 0x1cf   : > { %2201 = vmatpush3.bf16.msra.mxu0 %v2472_v53  ;;  %2265 = vmatpush3.bf16.msra.mxu1 %v2473_v17  ;;  %v3275_v9 = vpack.c.bf16 %v786_v5, %v785_v4  ;;  %v651_v18 = vmul.f32 %v2529_v19, %v3109_v25  ;;  %v722_v25 = vsel %vm716_vm1, %v707_v45, %v708_v8  ;;  %v2489_v17 = vld [vmem:[#allocation9 + $0xa8] sm:$0xff]   ;;  %v2491_v5 = vld [vmem:[#allocation9 + $0xf0] sm:$0xff]  }
 0x1d0   : > { %2202 = vmatprep.subr.bf16.mxu0 %v2474_v0  ;;  %2266 = vmatprep.subr.bf16.mxu1 %v2475_v1  ;;  %v670_v14 = vmul.f32 %v3132_v41, %v648_v36  ;;  %v710_v28 = vrot.slane %v3278_v12, 7  ;;  %v771_v54 = vmul.f32 %v3160_v11, %v722_v25  ;;  %v754_v45 = vmul.f32 %v3157_v10, %v3170_v24  ;;  %v2492_v19 = vld [vmem:[#allocation9 + $0x30] sm:$0xff]  }
 0x1d1   : > { %1085 = vmatmul.mubr.bf16.gmra.mrb[4].mxu0 %v3237_v59  ;;  %1198 = vmatmul.mubr.bf16.gmra.mrb[4].mxu1 %v3237_v59  ;;  %v673_v7 = vmul.f32 %v3132_v41, %v651_v18  ;;  %v2531_v15 = vpop.eup %2530 }
 0x1d2   : > { %1094 = vmatprep.mubr.bf16.mxu0 %v2731_v3  ;;  %1207 = vmatprep.mubr.bf16.mxu1 %v2731_v3  ;;  %v692_v16 = vadd.f32 %v3141_v49, %v670_v14  ;;  %v650_v20 = vmul.f32 %v2531_v15, %v3102_v13  ;;  %v2484_v13 = vld [vmem:[#allocation9 + $0x20] sm:$0xff]   ;;  %v787_v48 = vadd.f32 %v771_v54, %v749_v61 }
 0x1d3   : > { %2203 = vmatpush3.bf16.msra.mxu0 %v2476_v60  ;;  %2267 = vmatpush3.bf16.msra.mxu1 %v2477_v39  ;;  %v695_v59 = vadd.f32 %v3141_v49, %v673_v7  ;;  %v2497_v60 = vld [vmem:[#allocation9 + $0xb8] sm:$0xff]  }
 0x1d4   : > { %2204 = vmatprep.subr.bf16.mxu0 %v2478_v23  ;;  %2268 = vmatprep.subr.bf16.mxu1 %v2479_v29  ;;  %v709_v32 = vrot.slane %v692_v16, 7  ;;  %v672_v43 = vmul.f32 %v3132_v41, %v650_v20  ;;  %v750_v37 = vmul.f32 %v3157_v10, %v692_v16 }
 0x1d5   : > { %v712_v34 = vrot.slane %v695_v59, 7  ;;  %v753_v52 = vmul.f32 %v3157_v10, %v695_v59 }
 0x1d6   : > { %v721_v38 = vsel %vm716_vm1, %v708_v8, %v709_v32  ;;  %v720_v6 = vsel %vm716_vm1, %v709_v32, %v710_v28  ;;  %v694_v42 = vadd.f32 %v3141_v49, %v672_v43  ;;  %v751_v49 = vmul.f32 %v3157_v10, %v3278_v12 }
 0x1d7   : > { %2205 = vmatpush3.bf16.msra.mxu0 %v2480_v26  ;;  %2269 = vmatpush3.bf16.msra.mxu1 %v2481_v27  ;;  %v772_v63 = vmul.f32 %v3160_v11, %v721_v38  ;;  %v717_v41 = vsel %vm716_vm1, %v712_v34, %v713_v33  ;;  %v773_v33 = vmul.f32 %v3160_v11, %v720_v6 }
 0x1d8   : > { %2206 = vmatprep.subr.bf16.mxu0 %v2482_v31  ;;  %v776_v44 = vmul.f32 %v3160_v11, %v717_v41  ;;  %v711_v51 = vrot.slane %v694_v42, 7  ;;  %2270 = vmatprep.subr.bf16.mxu1 %v2483_v40  ;;  %v752_v22 = vmul.f32 %v3157_v10, %v694_v42  ;;  %v2494_v10 = vld [vmem:[#allocation9 + $0x78] sm:$0xff]  }
 0x1d9   : > { %1095 = vmatmul.mubr.bf16.gmra.mrb[8].mxu0 %v3254_v56  ;;  %1208 = vmatmul.mubr.bf16.gmra.mrb[8].mxu1 %v3254_v56  ;;  %v788_v50 = vadd.f32 %v772_v63, %v750_v37  ;;  %v2488_v56 = vld [vmem:[#allocation9 + $0x28] sm:$0xff]   ;;  %v789_v2 = vadd.f32 %v773_v33, %v751_v49 }
 0x1da   : > { %1104 = vmatprep.mubr.bf16.mxu0 %v2731_v3  ;;  %1217 = vmatprep.mubr.bf16.mxu1 %v2731_v3  ;;  %v718_v24 = vsel %vm716_vm1, %v711_v51, %v712_v34  ;;  %v719_v53 = vsel %vm716_vm1, %v710_v28, %v711_v51  ;;  %v792_v58 = vadd.f32 %v776_v44, %v754_v45 }
 0x1db   : > { %2207 = vmatpush3.bf16.msra.mxu0 %v2484_v13  ;;  %v798_v55 = vpack.c.bf16 %v788_v50, %v787_v48  ;;  %2271 = vmatpush3.bf16.msra.mxu1 %v2485_v47  ;;  %v774_v0 = vmul.f32 %v3160_v11, %v719_v53  ;;  %v775_v1 = vmul.f32 %v3160_v11, %v718_v24  ;;  %v2495_v11 = vld [vmem:[#allocation9 + $0xf8] sm:$0xff]  }
 0x1dc   : > { %2208 = vmatprep.subr.bf16.mxu0 %v2486_v62  ;;  %2272 = vmatprep.subr.bf16.mxu1 %v2487_v30 }
 0x1dd   : > { %v790_v46 = vadd.f32 %v774_v0, %v752_v22  ;;  %v791_v4 = vadd.f32 %v775_v1, %v753_v52 }
 0x1df   : > { %2209 = vmatpush3.bf16.msra.mxu0 %v2488_v56  ;;  %2273 = vmatpush3.bf16.msra.mxu1 %v2489_v17  ;;  %v799_v8 = vpack.c.bf16 %v790_v46, %v789_v2  ;;  %v800_v36 = vpack.c.bf16 %v792_v58, %v791_v4 }
 0x1e0   : > { %2210 = vmatprep.subr.bf16.mxu0 %v2490_v57  ;;  %2274 = vmatprep.subr.bf16.mxu1 %v2491_v5 }
 0x1e1   : > { %1105 = vmatmul.mubr.bf16.gmra.mrb[12].mxu0 %v3257_v35  ;;  %1218 = vmatmul.mubr.bf16.gmra.mrb[12].mxu1 %v3257_v35  ;;  %v2496_v35 = vld [vmem:[#allocation9 + $0x38] sm:$0xff]  }
 0x1e2   : > { %1114 = vmatprep.mubr.bf16.mxu0 %v2731_v3  ;;  %1227 = vmatprep.mubr.bf16.mxu1 %v2731_v3 }
 0x1e3   : > { %2211 = vmatpush3.bf16.msra.mxu0 %v2492_v19  ;;  %2275 = vmatpush3.bf16.msra.mxu1 %v2493_v21 }
 0x1e4   : > { %2212 = vmatprep.subr.bf16.mxu0 %v2494_v10  ;;  %2276 = vmatprep.subr.bf16.mxu1 %v2495_v11 }
 0x1e7   : > { %2213 = vmatpush3.bf16.msra.mxu0 %v2496_v35  ;;  %2277 = vmatpush3.bf16.msra.mxu1 %v2497_v60 }
 0x1e9   : > { %1115 = vmatmul.mubr.bf16.gmra.mrb[16].mxu0 %v3275_v9  ;;  %1228 = vmatmul.mubr.bf16.gmra.mrb[16].mxu1 %v3275_v9 }
 0x1ea   : > { %1124 = vmatprep.mubr.bf16.mxu0 %v2731_v3  ;;  %1237 = vmatprep.mubr.bf16.mxu1 %v2731_v3 }
 0x1f1   : > { %1125 = vmatmul.mubr.bf16.gmra.mrb[20].mxu0 %v798_v55  ;;  %1238 = vmatmul.mubr.bf16.gmra.mrb[20].mxu1 %v798_v55 }
 0x1f2   : > { %1134 = vmatprep.mubr.bf16.mxu0 %v2731_v3  ;;  %1247 = vmatprep.mubr.bf16.mxu1 %v2731_v3 }
 0x1f9   : > { %1135 = vmatmul.mubr.bf16.gmra.mrb[24].mxu0 %v799_v8  ;;  %1248 = vmatmul.mubr.bf16.gmra.mrb[24].mxu1 %v799_v8 }
 0x1fa   : > { %1144 = vmatprep.mubr.bf16.mxu0 %v2731_v3  ;;  %1257 = vmatprep.mubr.bf16.mxu1 %v2731_v3 }
 0x201   : > { %1145 = vmatmul.mubr.bf16.gmra.mrb[28].mxu0 %v800_v36  ;;  %1258 = vmatmul.mubr.bf16.gmra.mrb[28].mxu1 %v800_v36 }
 0x29c   : > { %v1076_v39 = vpop.f32.mrb[0].mxu0  ;;  %v1189_v9 = vpop.f32.mrb[0].mxu1 }
 0x29d   : > { %v1268_v12 = vmax.f32 %v1076_v39, 0.0  ;;  %v1270_v18 = vmax.f32 %v1189_v9, 0.0  ;;  %v1078_v23 = vpop.f32.mrb[1].mxu0  ;;  %v1191_v29 = vpop.f32.mrb[1].mxu1 }
 0x29e   : > { %v1269_v14 = vmax.f32 %v1078_v23, 0.0  ;;  %v1271_v7 = vmax.f32 %v1191_v29, 0.0  ;;  %v1080_v15 = vpop.f32.mrb[2].mxu0  ;;  %v1193_v3 = vpop.f32.mrb[2].mxu1 }
 0x29f   : > { %v1272_v25 = vmax.f32 %v1080_v15, 0.0  ;;  %v1274_v16 = vmax.f32 %v1193_v3, 0.0  ;;  %v1082_v26 = vpop.f32.mrb[3].mxu0  ;;  %v1195_v27 = vpop.f32.mrb[3].mxu1  ;;  %v1332_v20 = vmul.f32 %v1268_v12, %v1268_v12  ;;  %v1334_v31 = vmul.f32 %v1270_v18, %v1270_v18 }
 0x2a0   : > { %v1273_v28 = vmax.f32 %v1082_v26, 0.0  ;;  %v1275_v59 = vmax.f32 %v1195_v27, 0.0  ;;  %v1333_v34 = vmul.f32 %v1269_v14, %v1269_v14  ;;  %v1335_v43 = vmul.f32 %v1271_v7, %v1271_v7 }
 0x2a1   : > { %v1336_v32 = vmul.f32 %v1272_v25, %v1272_v25  ;;  %v1338_v54 = vmul.f32 %v1274_v16, %v1274_v16 }
 0x2a2   : > { %v1337_v61 = vmul.f32 %v1273_v28, %v1273_v28  ;;  %v1339_v38 = vmul.f32 %v1275_v59, %v1275_v59 }
 0x2a3   : > { %v1412_v37 = vpack.c.bf16 %v1336_v32, %v1332_v20  ;;  %v1414_v40 = vpack.c.bf16 %v1338_v54, %v1334_v31 }
 0x2a4   : > { %v1413_v13 = vpack.c.bf16 %v1337_v61, %v1333_v34  ;;  %v1415_v6 = vpack.c.bf16 %v1339_v38, %v1335_v43  ;;  %v1086_v63 = vpop.f32.mrb[4].mxu0  ;;  %v1199_v41 = vpop.f32.mrb[4].mxu1 }
 0x2a5   : > { %v1276_v42 = vmax.f32 %v1086_v63, 0.0  ;;  %v1278_v47 = vmax.f32 %v1199_v41, 0.0  ;;  %v1088_v62 = vpop.f32.mrb[5].mxu0  ;;  %v1201_v44 = vpop.f32.mrb[5].mxu1 }
 0x2a6   : > { %v1277_v30 = vmax.f32 %v1088_v62, 0.0  ;;  %v1279_v45 = vmax.f32 %v1201_v44, 0.0  ;;  %v1090_v48 = vpop.f32.mrb[6].mxu0  ;;  %v1203_v50 = vpop.f32.mrb[6].mxu1  ;;  %1732 = vmatprep.mubr.bf16.mxu0 %v1413_v13  ;;  %1829 = vmatprep.mubr.bf16.mxu1 %v1415_v6 }
 0x2a7   : > { %v1280_v51 = vmax.f32 %v1090_v48, 0.0  ;;  %v1282_v49 = vmax.f32 %v1203_v50, 0.0  ;;  %v1092_v33 = vpop.f32.mrb[7].mxu0  ;;  %v1205_v52 = vpop.f32.mrb[7].mxu1  ;;  %1733 = vmatmul.mubr.bf16.vlgmr.msra.gmra.mrb[32].mxu0 %v1412_v37  ;;  %1830 = vmatmul.mubr.bf16.vlgmr.msra.gmra.mrb[32].mxu1 %v1414_v40  ;;  %v1340_v24 = vmul.f32 %v1276_v42, %v1276_v42  ;;  %v1342_v53 = vmul.f32 %v1278_v47, %v1278_v47 }
 0x2a8   : > { %v1281_v56 = vmax.f32 %v1092_v33, 0.0  ;;  %v1283_v55 = vmax.f32 %v1205_v52, 0.0  ;;  %v1341_v58 = vmul.f32 %v1277_v30, %v1277_v30  ;;  %v1343_v22 = vmul.f32 %v1279_v45, %v1279_v45 }
 0x2a9   : > { %v1344_v17 = vmul.f32 %v1280_v51, %v1280_v51  ;;  %v1346_v57 = vmul.f32 %v1282_v49, %v1282_v49 }
 0x2aa   : > { %v1345_v0 = vmul.f32 %v1281_v56, %v1281_v56  ;;  %v1347_v1 = vmul.f32 %v1283_v55, %v1283_v55 }
 0x2ab   : > { %v1416_v2 = vpack.c.bf16 %v1344_v17, %v1340_v24  ;;  %v1418_v46 = vpack.c.bf16 %v1346_v57, %v1342_v53 }
 0x2ac   : > { %v1417_v4 = vpack.c.bf16 %v1345_v0, %v1341_v58  ;;  %v1419_v5 = vpack.c.bf16 %v1347_v1, %v1343_v22  ;;  %v1096_v19 = vpop.f32.mrb[8].mxu0  ;;  %v1209_v21 = vpop.f32.mrb[8].mxu1 }
 0x2ad   : > { %v1284_v8 = vmax.f32 %v1096_v19, 0.0  ;;  %v1286_v36 = vmax.f32 %v1209_v21, 0.0  ;;  %v1098_v10 = vpop.f32.mrb[9].mxu0  ;;  %v1211_v11 = vpop.f32.mrb[9].mxu1 }
 0x2ae   : > { %v1285_v35 = vmax.f32 %v1098_v10, 0.0  ;;  %v1287_v60 = vmax.f32 %v1211_v11, 0.0  ;;  %v1100_v39 = vpop.f32.mrb[10].mxu0  ;;  %v1213_v9 = vpop.f32.mrb[10].mxu1  ;;  %1740 = vmatprep.mubr.bf16.mxu0 %v1417_v4  ;;  %1837 = vmatprep.mubr.bf16.mxu1 %v1419_v5 }
 0x2af   : > { %v1288_v12 = vmax.f32 %v1100_v39, 0.0  ;;  %v1290_v18 = vmax.f32 %v1213_v9, 0.0  ;;  %v1102_v23 = vpop.f32.mrb[11].mxu0  ;;  %v1215_v29 = vpop.f32.mrb[11].mxu1  ;;  %1741 = vmatmul.mubr.bf16.gmra.mrb[36].mxu0 %v1416_v2  ;;  %1838 = vmatmul.mubr.bf16.gmra.mrb[36].mxu1 %v1418_v46  ;;  %v1348_v15 = vmul.f32 %v1284_v8, %v1284_v8  ;;  %v1350_v3 = vmul.f32 %v1286_v36, %v1286_v36 }
 0x2b0   : > { %v1289_v14 = vmax.f32 %v1102_v23, 0.0  ;;  %v1291_v7 = vmax.f32 %v1215_v29, 0.0  ;;  %v1349_v26 = vmul.f32 %v1285_v35, %v1285_v35  ;;  %v1351_v27 = vmul.f32 %v1287_v60, %v1287_v60 }
 0x2b1   : > { %v1352_v25 = vmul.f32 %v1288_v12, %v1288_v12  ;;  %v1354_v16 = vmul.f32 %v1290_v18, %v1290_v18 }
 0x2b2   : > { %v1353_v28 = vmul.f32 %v1289_v14, %v1289_v14  ;;  %v1355_v59 = vmul.f32 %v1291_v7, %v1291_v7 }
 0x2b3   : > { %v1420_v20 = vpack.c.bf16 %v1352_v25, %v1348_v15  ;;  %v1422_v31 = vpack.c.bf16 %v1354_v16, %v1350_v3 }
 0x2b4   : > { %v1421_v32 = vpack.c.bf16 %v1353_v28, %v1349_v26  ;;  %v1423_v54 = vpack.c.bf16 %v1355_v59, %v1351_v27  ;;  %v1106_v34 = vpop.f32.mrb[12].mxu0  ;;  %v1219_v43 = vpop.f32.mrb[12].mxu1 }
 0x2b5   : > { %v1292_v61 = vmax.f32 %v1106_v34, 0.0  ;;  %v1294_v38 = vmax.f32 %v1219_v43, 0.0  ;;  %v1108_v37 = vpop.f32.mrb[13].mxu0  ;;  %v1221_v40 = vpop.f32.mrb[13].mxu1 }
 0x2b6   : > { %v1293_v13 = vmax.f32 %v1108_v37, 0.0  ;;  %v1295_v6 = vmax.f32 %v1221_v40, 0.0  ;;  %v1110_v63 = vpop.f32.mrb[14].mxu0  ;;  %v1223_v41 = vpop.f32.mrb[14].mxu1  ;;  %1748 = vmatprep.mubr.bf16.mxu0 %v1421_v32  ;;  %1845 = vmatprep.mubr.bf16.mxu1 %v1423_v54 }
 0x2b7   : > { %v1296_v42 = vmax.f32 %v1110_v63, 0.0  ;;  %v1298_v47 = vmax.f32 %v1223_v41, 0.0  ;;  %v1112_v62 = vpop.f32.mrb[15].mxu0  ;;  %v1225_v44 = vpop.f32.mrb[15].mxu1  ;;  %1749 = vmatmul.mubr.bf16.gmra.mrb[40].mxu0 %v1420_v20  ;;  %1846 = vmatmul.mubr.bf16.gmra.mrb[40].mxu1 %v1422_v31  ;;  %v1356_v48 = vmul.f32 %v1292_v61, %v1292_v61  ;;  %v1358_v50 = vmul.f32 %v1294_v38, %v1294_v38 }
 0x2b8   : > { %v1297_v30 = vmax.f32 %v1112_v62, 0.0  ;;  %v1299_v45 = vmax.f32 %v1225_v44, 0.0  ;;  %v1357_v33 = vmul.f32 %v1293_v13, %v1293_v13  ;;  %v1359_v52 = vmul.f32 %v1295_v6, %v1295_v6 }
 0x2b9   : > { %v1360_v51 = vmul.f32 %v1296_v42, %v1296_v42  ;;  %v1362_v49 = vmul.f32 %v1298_v47, %v1298_v47 }
 0x2ba   : > { %v1361_v56 = vmul.f32 %v1297_v30, %v1297_v30  ;;  %v1363_v55 = vmul.f32 %v1299_v45, %v1299_v45 }
 0x2bb   : > { %v1424_v24 = vpack.c.bf16 %v1360_v51, %v1356_v48  ;;  %v1426_v53 = vpack.c.bf16 %v1362_v49, %v1358_v50 }
 0x2bc   : > { %v1425_v17 = vpack.c.bf16 %v1361_v56, %v1357_v33  ;;  %v1427_v57 = vpack.c.bf16 %v1363_v55, %v1359_v52  ;;  %v1116_v58 = vpop.f32.mrb[16].mxu0  ;;  %v1229_v22 = vpop.f32.mrb[16].mxu1 }
 0x2bd   : > { %v1300_v0 = vmax.f32 %v1116_v58, 0.0  ;;  %v1302_v1 = vmax.f32 %v1229_v22, 0.0  ;;  %v1118_v2 = vpop.f32.mrb[17].mxu0  ;;  %v1231_v46 = vpop.f32.mrb[17].mxu1 }
 0x2be   : > { %v1301_v4 = vmax.f32 %v1118_v2, 0.0  ;;  %v1303_v5 = vmax.f32 %v1231_v46, 0.0  ;;  %v1120_v19 = vpop.f32.mrb[18].mxu0  ;;  %v1233_v21 = vpop.f32.mrb[18].mxu1  ;;  %1756 = vmatprep.mubr.bf16.mxu0 %v1425_v17  ;;  %1853 = vmatprep.mubr.bf16.mxu1 %v1427_v57 }
 0x2bf   : > { %v1304_v8 = vmax.f32 %v1120_v19, 0.0  ;;  %v1306_v36 = vmax.f32 %v1233_v21, 0.0  ;;  %v1122_v10 = vpop.f32.mrb[19].mxu0  ;;  %v1235_v11 = vpop.f32.mrb[19].mxu1  ;;  %1757 = vmatmul.mubr.bf16.gmra.mrb[44].mxu0 %v1424_v24  ;;  %1854 = vmatmul.mubr.bf16.gmra.mrb[44].mxu1 %v1426_v53  ;;  %v1364_v39 = vmul.f32 %v1300_v0, %v1300_v0  ;;  %v1366_v9 = vmul.f32 %v1302_v1, %v1302_v1 }
 0x2c0   : > { %v1305_v35 = vmax.f32 %v1122_v10, 0.0  ;;  %v1307_v60 = vmax.f32 %v1235_v11, 0.0  ;;  %v1365_v23 = vmul.f32 %v1301_v4, %v1301_v4  ;;  %v1367_v29 = vmul.f32 %v1303_v5, %v1303_v5 }
 0x2c1   : > { %v1368_v12 = vmul.f32 %v1304_v8, %v1304_v8  ;;  %v1370_v18 = vmul.f32 %v1306_v36, %v1306_v36 }
 0x2c2   : > { %v1369_v14 = vmul.f32 %v1305_v35, %v1305_v35  ;;  %v1371_v7 = vmul.f32 %v1307_v60, %v1307_v60 }
 0x2c3   : > { %v1428_v15 = vpack.c.bf16 %v1368_v12, %v1364_v39  ;;  %v1430_v3 = vpack.c.bf16 %v1370_v18, %v1366_v9 }
 0x2c4   : > { %v1429_v25 = vpack.c.bf16 %v1369_v14, %v1365_v23  ;;  %v1431_v16 = vpack.c.bf16 %v1371_v7, %v1367_v29  ;;  %v1126_v26 = vpop.f32.mrb[20].mxu0  ;;  %v1239_v27 = vpop.f32.mrb[20].mxu1 }
 0x2c5   : > { %v1308_v28 = vmax.f32 %v1126_v26, 0.0  ;;  %v1310_v59 = vmax.f32 %v1239_v27, 0.0  ;;  %v1128_v20 = vpop.f32.mrb[21].mxu0  ;;  %v1241_v31 = vpop.f32.mrb[21].mxu1 }
 0x2c6   : > { %v1309_v32 = vmax.f32 %v1128_v20, 0.0  ;;  %v1311_v54 = vmax.f32 %v1241_v31, 0.0  ;;  %v1130_v34 = vpop.f32.mrb[22].mxu0  ;;  %v1243_v43 = vpop.f32.mrb[22].mxu1  ;;  %1764 = vmatprep.mubr.bf16.mxu0 %v1429_v25  ;;  %1861 = vmatprep.mubr.bf16.mxu1 %v1431_v16 }
 0x2c7   : > { %v1312_v61 = vmax.f32 %v1130_v34, 0.0  ;;  %v1314_v38 = vmax.f32 %v1243_v43, 0.0  ;;  %v1132_v37 = vpop.f32.mrb[23].mxu0  ;;  %v1245_v40 = vpop.f32.mrb[23].mxu1  ;;  %1765 = vmatmul.mubr.bf16.gmra.mrb[48].mxu0 %v1428_v15  ;;  %1862 = vmatmul.mubr.bf16.gmra.mrb[48].mxu1 %v1430_v3  ;;  %v1372_v63 = vmul.f32 %v1308_v28, %v1308_v28  ;;  %v1374_v41 = vmul.f32 %v1310_v59, %v1310_v59 }
 0x2c8   : > { %v1313_v13 = vmax.f32 %v1132_v37, 0.0  ;;  %v1315_v6 = vmax.f32 %v1245_v40, 0.0  ;;  %v1373_v62 = vmul.f32 %v1309_v32, %v1309_v32  ;;  %v1375_v44 = vmul.f32 %v1311_v54, %v1311_v54 }
 0x2c9   : > { %v1376_v42 = vmul.f32 %v1312_v61, %v1312_v61  ;;  %v1378_v47 = vmul.f32 %v1314_v38, %v1314_v38 }
 0x2ca   : > { %v1377_v30 = vmul.f32 %v1313_v13, %v1313_v13  ;;  %v1379_v45 = vmul.f32 %v1315_v6, %v1315_v6 }
 0x2cb   : > { %v1432_v48 = vpack.c.bf16 %v1376_v42, %v1372_v63  ;;  %v1434_v50 = vpack.c.bf16 %v1378_v47, %v1374_v41 }
 0x2cc   : > { %v1433_v51 = vpack.c.bf16 %v1377_v30, %v1373_v62  ;;  %v1435_v49 = vpack.c.bf16 %v1379_v45, %v1375_v44  ;;  %v1136_v33 = vpop.f32.mrb[24].mxu0  ;;  %v1249_v52 = vpop.f32.mrb[24].mxu1 }
 0x2cd   : > { %v1316_v56 = vmax.f32 %v1136_v33, 0.0  ;;  %v1318_v55 = vmax.f32 %v1249_v52, 0.0  ;;  %v1138_v24 = vpop.f32.mrb[25].mxu0  ;;  %v1251_v53 = vpop.f32.mrb[25].mxu1 }
 0x2ce   : > { %v1317_v17 = vmax.f32 %v1138_v24, 0.0  ;;  %v1319_v57 = vmax.f32 %v1251_v53, 0.0  ;;  %v1140_v58 = vpop.f32.mrb[26].mxu0  ;;  %v1253_v22 = vpop.f32.mrb[26].mxu1  ;;  %1772 = vmatprep.mubr.bf16.mxu0 %v1433_v51  ;;  %1869 = vmatprep.mubr.bf16.mxu1 %v1435_v49  ;;  %v2532_v53 = vld [vmem:[%s2979_s18] sm:$0xff] }
 0x2cf   : > { %v1320_v0 = vmax.f32 %v1140_v58, 0.0  ;;  %v1322_v1 = vmax.f32 %v1253_v22, 0.0  ;;  %v1142_v2 = vpop.f32.mrb[27].mxu0  ;;  %v1255_v46 = vpop.f32.mrb[27].mxu1  ;;  %1773 = vmatmul.mubr.bf16.gmra.mrb[52].mxu0 %v1432_v48  ;;  %1870 = vmatmul.mubr.bf16.gmra.mrb[52].mxu1 %v1434_v50  ;;  %v1380_v19 = vmul.f32 %v1316_v56, %v1316_v56  ;;  %v1382_v21 = vmul.f32 %v1318_v55, %v1318_v55  ;;  %v2533_v58 = vld [vmem:[%s2979_s18 + $0x8] sm:$0xff] }
 0x2d0   : > { %v1321_v4 = vmax.f32 %v1142_v2, 0.0  ;;  %v1323_v5 = vmax.f32 %v1255_v46, 0.0  ;;  %v1381_v10 = vmul.f32 %v1317_v17, %v1317_v17  ;;  %v1383_v11 = vmul.f32 %v1319_v57, %v1319_v57 }
 0x2d1   : > { %v1384_v8 = vmul.f32 %v1320_v0, %v1320_v0  ;;  %v1386_v36 = vmul.f32 %v1322_v1, %v1322_v1 }
 0x2d2   : > { %v1385_v35 = vmul.f32 %v1321_v4, %v1321_v4  ;;  %v1387_v60 = vmul.f32 %v1323_v5, %v1323_v5 }
 0x2d3   : > { %v1436_v39 = vpack.c.bf16 %v1384_v8, %v1380_v19  ;;  %v1438_v9 = vpack.c.bf16 %v1386_v36, %v1382_v21 }
 0x2d4   : > { %v1437_v12 = vpack.c.bf16 %v1385_v35, %v1381_v10  ;;  %v1439_v18 = vpack.c.bf16 %v1387_v60, %v1383_v11  ;;  %v1146_v23 = vpop.f32.mrb[28].mxu0  ;;  %v1259_v29 = vpop.f32.mrb[28].mxu1  ;;  %v2534_v60 = vld [vmem:[%s2979_s18 + $0x10] sm:$0xff] }
 0x2d5   : > { %v1324_v14 = vmax.f32 %v1146_v23, 0.0  ;;  %v1326_v7 = vmax.f32 %v1259_v29, 0.0  ;;  %v1148_v15 = vpop.f32.mrb[29].mxu0  ;;  %v1261_v3 = vpop.f32.mrb[29].mxu1 }
 0x2d6   : > { %v1325_v25 = vmax.f32 %v1148_v15, 0.0  ;;  %v1327_v16 = vmax.f32 %v1261_v3, 0.0  ;;  %v1150_v26 = vpop.f32.mrb[30].mxu0  ;;  %v1263_v27 = vpop.f32.mrb[30].mxu1  ;;  %1780 = vmatprep.mubr.bf16.mxu0 %v1437_v12  ;;  %1877 = vmatprep.mubr.bf16.mxu1 %v1439_v18  ;;  %v2535_v12 = vld [vmem:[%s2979_s18 + $0x18] sm:$0xff] }
 0x2d7   : > { %v1328_v28 = vmax.f32 %v1150_v26, 0.0  ;;  %v1330_v59 = vmax.f32 %v1263_v27, 0.0  ;;  %v1152_v20 = vpop.f32.mrb[31].mxu0  ;;  %v1265_v31 = vpop.f32.mrb[31].mxu1  ;;  %1781 = vmatmul.mubr.bf16.gmra.mrb[56].mxu0 %v1436_v39  ;;  %1878 = vmatmul.mubr.bf16.gmra.mrb[56].mxu1 %v1438_v9  ;;  %v1388_v34 = vmul.f32 %v1324_v14, %v1324_v14  ;;  %v1390_v43 = vmul.f32 %v1326_v7, %v1326_v7 }
 0x2d8   : > { %v1329_v32 = vmax.f32 %v1152_v20, 0.0  ;;  %v1331_v54 = vmax.f32 %v1265_v31, 0.0  ;;  %v1389_v37 = vmul.f32 %v1325_v25, %v1325_v25  ;;  %v1391_v40 = vmul.f32 %v1327_v16, %v1327_v16  ;;  %v2536_v31 = vld [vmem:[%s2979_s18 + $0x20] sm:$0xff] }
 0x2d9   : > { %v1392_v61 = vmul.f32 %v1328_v28, %v1328_v28  ;;  %v1394_v38 = vmul.f32 %v1330_v59, %v1330_v59 }
 0x2da   : > { %v1393_v13 = vmul.f32 %v1329_v32, %v1329_v32  ;;  %v1395_v6 = vmul.f32 %v1331_v54, %v1331_v54 }
 0x2db   : > { %v1440_v63 = vpack.c.bf16 %v1392_v61, %v1388_v34  ;;  %v1442_v41 = vpack.c.bf16 %v1394_v38, %v1390_v43  ;;  %v2537_v34 = vld [vmem:[%s2979_s18 + $0x28] sm:$0xff] }
 0x2dc   : > { %v1441_v42 = vpack.c.bf16 %v1393_v13, %v1389_v37  ;;  %v1443_v47 = vpack.c.bf16 %v1395_v6, %v1391_v40 }
 0x2de   : > { %1788 = vmatprep.mubr.bf16.mxu0 %v1441_v42  ;;  %1885 = vmatprep.mubr.bf16.mxu1 %v1443_v47 }
 0x2df   : > { %1789 = vmatmul.mubr.bf16.gmra.mrb[60].mxu0 %v1440_v63  ;;  %1886 = vmatmul.mubr.bf16.gmra.mrb[60].mxu1 %v1442_v41 }
 0x37a   : > { %v2214_v62 = vpop.f32.mrb[32].mxu0  ;;  %v2278_v44 = vpop.f32.mrb[32].mxu1 }
 0x37b   : > { %v2215_v30 = vpop.f32.mrb[33].mxu0  ;;  %v2279_v45 = vpop.f32.mrb[33].mxu1 }
 0x37c   : > { %v2216_v48 = vadd.f32 %v2215_v30, %v2214_v62  ;;  %v2280_v50 = vadd.f32 %v2279_v45, %v2278_v44  ;;  %v2217_v51 = vpop.f32.mrb[34].mxu0  ;;  %v2281_v49 = vpop.f32.mrb[34].mxu1  ;;  %v2538_v45 = vld [vmem:[%s2979_s18 + $0x30] sm:$0xff] }
 0x37d   : > { %v2218_v33 = vpop.f32.mrb[35].mxu0  ;;  %v2282_v52 = vpop.f32.mrb[35].mxu1 }
 0x37e   : > { %v1832_v56 = vadd.f32 %v2280_v50, %v2216_v48  ;;  %v2219_v55 = vadd.f32 %v2218_v33, %v2217_v51  ;;  %v2283_v24 = vadd.f32 %v2282_v52, %v2281_v49  ;;  %v2539_v51 = vld [vmem:[%s2979_s18 + $0x38] sm:$0xff] }
 0x380   : > { %v1894_v17 = vadd.f32 %v2532_v53, %v1832_v56  ;;  %v1835_v57 = vadd.f32 %v2283_v24, %v2219_v55 }
 0x382   : > { %1945 = vst [vmem:[%s3340_s30] sm:$0xff] %v1894_v17  ;;  %v1895_v22 = vadd.f32 %v2533_v58, %v1835_v57  ;;  %v2220_v0 = vpop.f32.mrb[36].mxu0  ;;  %v2284_v1 = vpop.f32.mrb[36].mxu1 }
 0x383   : > { %v2221_v2 = vpop.f32.mrb[37].mxu0  ;;  %v2285_v46 = vpop.f32.mrb[37].mxu1 }
 0x384   : > { %1946 = vst [vmem:[%s3340_s30 + $0x8] sm:$0xff] %v1895_v22  ;;  %v2222_v4 = vadd.f32 %v2221_v2, %v2220_v0  ;;  %v2286_v5 = vadd.f32 %v2285_v46, %v2284_v1  ;;  %v2223_v19 = vpop.f32.mrb[38].mxu0  ;;  %v2287_v21 = vpop.f32.mrb[38].mxu1  ;;  %v2540_v46 = vld [vmem:[%s2979_s18 + $0x40] sm:$0xff] }
 0x385   : > { %v2224_v8 = vpop.f32.mrb[39].mxu0  ;;  %v2288_v36 = vpop.f32.mrb[39].mxu1 }
 0x386   : > { %v1840_v10 = vadd.f32 %v2286_v5, %v2222_v4  ;;  %v2225_v11 = vadd.f32 %v2224_v8, %v2223_v19  ;;  %v2289_v35 = vadd.f32 %v2288_v36, %v2287_v21  ;;  %v2541_v19 = vld [vmem:[%s2979_s18 + $0x48] sm:$0xff] }
 0x388   : > { %v1896_v39 = vadd.f32 %v2534_v60, %v1840_v10  ;;  %v1843_v9 = vadd.f32 %v2289_v35, %v2225_v11 }
 0x38a   : > { %1947 = vst [vmem:[%s3340_s30 + $0x10] sm:$0xff] %v1896_v39  ;;  %v1897_v18 = vadd.f32 %v2535_v12, %v1843_v9  ;;  %v2226_v23 = vpop.f32.mrb[40].mxu0  ;;  %v2290_v29 = vpop.f32.mrb[40].mxu1 }
 0x38b   : > { %v2227_v14 = vpop.f32.mrb[41].mxu0  ;;  %v2291_v7 = vpop.f32.mrb[41].mxu1 }
 0x38c   : > { %1948 = vst [vmem:[%s3340_s30 + $0x18] sm:$0xff] %v1897_v18  ;;  %v2228_v15 = vadd.f32 %v2227_v14, %v2226_v23  ;;  %v2292_v3 = vadd.f32 %v2291_v7, %v2290_v29  ;;  %v2229_v25 = vpop.f32.mrb[42].mxu0  ;;  %v2293_v16 = vpop.f32.mrb[42].mxu1  ;;  %v2542_v7 = vld [vmem:[%s2979_s18 + $0x50] sm:$0xff] }
 0x38d   : > { %v2230_v26 = vpop.f32.mrb[43].mxu0  ;;  %v2294_v27 = vpop.f32.mrb[43].mxu1 }
 0x38e   : > { %v1848_v28 = vadd.f32 %v2292_v3, %v2228_v15  ;;  %v2231_v59 = vadd.f32 %v2230_v26, %v2229_v25  ;;  %v2295_v20 = vadd.f32 %v2294_v27, %v2293_v16  ;;  %v2543_v25 = vld [vmem:[%s2979_s18 + $0x58] sm:$0xff] }
 0x390   : > { %v1898_v32 = vadd.f32 %v2536_v31, %v1848_v28  ;;  %v1851_v54 = vadd.f32 %v2295_v20, %v2231_v59 }
 0x392   : > { %1949 = vst [vmem:[%s3340_s30 + $0x20] sm:$0xff] %v1898_v32  ;;  %v1899_v43 = vadd.f32 %v2537_v34, %v1851_v54  ;;  %v2232_v61 = vpop.f32.mrb[44].mxu0  ;;  %v2296_v38 = vpop.f32.mrb[44].mxu1 }
 0x393   : > { %v2233_v37 = vpop.f32.mrb[45].mxu0  ;;  %v2297_v40 = vpop.f32.mrb[45].mxu1 }
 0x394   : > { %1950 = vst [vmem:[%s3340_s30 + $0x28] sm:$0xff] %v1899_v43  ;;  %v2234_v13 = vadd.f32 %v2233_v37, %v2232_v61  ;;  %v2298_v6 = vadd.f32 %v2297_v40, %v2296_v38  ;;  %v2235_v63 = vpop.f32.mrb[46].mxu0  ;;  %v2299_v41 = vpop.f32.mrb[46].mxu1  ;;  %v2544_v40 = vld [vmem:[%s2979_s18 + $0x60] sm:$0xff] }
 0x395   : > { %v2236_v42 = vpop.f32.mrb[47].mxu0  ;;  %v2300_v47 = vpop.f32.mrb[47].mxu1 }
 0x396   : > { %v1856_v62 = vadd.f32 %v2298_v6, %v2234_v13  ;;  %v2237_v44 = vadd.f32 %v2236_v42, %v2235_v63  ;;  %v2301_v30 = vadd.f32 %v2300_v47, %v2299_v41  ;;  %v2545_v63 = vld [vmem:[%s2979_s18 + $0x68] sm:$0xff] }
 0x398   : > { %v1900_v48 = vadd.f32 %v2538_v45, %v1856_v62  ;;  %v1859_v50 = vadd.f32 %v2301_v30, %v2237_v44 }
 0x39a   : > { %1951 = vst [vmem:[%s3340_s30 + $0x30] sm:$0xff] %v1900_v48  ;;  %v1901_v49 = vadd.f32 %v2539_v51, %v1859_v50  ;;  %v2238_v33 = vpop.f32.mrb[48].mxu0  ;;  %v2302_v52 = vpop.f32.mrb[48].mxu1 }
 0x39b   : > { %v2239_v56 = vpop.f32.mrb[49].mxu0  ;;  %v2303_v55 = vpop.f32.mrb[49].mxu1 }
 0x39c   : > { %1952 = vst [vmem:[%s3340_s30 + $0x38] sm:$0xff] %v1901_v49  ;;  %v2240_v24 = vadd.f32 %v2239_v56, %v2238_v33  ;;  %v2304_v53 = vadd.f32 %v2303_v55, %v2302_v52  ;;  %v2241_v17 = vpop.f32.mrb[50].mxu0  ;;  %v2305_v57 = vpop.f32.mrb[50].mxu1  ;;  %v2546_v55 = vld [vmem:[%s2979_s18 + $0x70] sm:$0xff] }
 0x39d   : > { %v2242_v58 = vpop.f32.mrb[51].mxu0  ;;  %v2306_v22 = vpop.f32.mrb[51].mxu1 }
 0x39e   : > { %v1864_v0 = vadd.f32 %v2304_v53, %v2240_v24  ;;  %v2243_v1 = vadd.f32 %v2242_v58, %v2241_v17  ;;  %v2307_v2 = vadd.f32 %v2306_v22, %v2305_v57  ;;  %v2547_v17 = vld [vmem:[%s2979_s18 + $0x78] sm:$0xff] }
 0x3a0   : > { %v1902_v4 = vadd.f32 %v2540_v46, %v1864_v0  ;;  %v1867_v5 = vadd.f32 %v2307_v2, %v2243_v1 }
 0x3a2   : > { %1953 = vst [vmem:[%s3340_s30 + $0x40] sm:$0xff] %v1902_v4  ;;  %v1903_v21 = vadd.f32 %v2541_v19, %v1867_v5  ;;  %v2244_v8 = vpop.f32.mrb[52].mxu0  ;;  %v2308_v36 = vpop.f32.mrb[52].mxu1 }
 0x3a3   : > { %v2245_v10 = vpop.f32.mrb[53].mxu0  ;;  %v2309_v11 = vpop.f32.mrb[53].mxu1 }
 0x3a4   : > { %1954 = vst [vmem:[%s3340_s30 + $0x48] sm:$0xff] %v1903_v21  ;;  %v2246_v35 = vadd.f32 %v2245_v10, %v2244_v8  ;;  %v2310_v60 = vadd.f32 %v2309_v11, %v2308_v36  ;;  %v2247_v39 = vpop.f32.mrb[54].mxu0  ;;  %v2311_v9 = vpop.f32.mrb[54].mxu1 }
 0x3a5   : > { %v2248_v12 = vpop.f32.mrb[55].mxu0  ;;  %v2312_v18 = vpop.f32.mrb[55].mxu1 }
 0x3a6   : > { %v1872_v23 = vadd.f32 %v2310_v60, %v2246_v35  ;;  %v2249_v29 = vadd.f32 %v2248_v12, %v2247_v39  ;;  %v2313_v14 = vadd.f32 %v2312_v18, %v2311_v9 }
 0x3a8   : > { %v1904_v15 = vadd.f32 %v2542_v7, %v1872_v23  ;;  %v1875_v3 = vadd.f32 %v2313_v14, %v2249_v29 }
 0x3aa   : > { %1955 = vst [vmem:[%s3340_s30 + $0x50] sm:$0xff] %v1904_v15  ;;  %v1905_v16 = vadd.f32 %v2543_v25, %v1875_v3  ;;  %v2250_v26 = vpop.f32.mrb[56].mxu0  ;;  %v2314_v27 = vpop.f32.mrb[56].mxu1 }
 0x3ab   : > { %v2251_v28 = vpop.f32.mrb[57].mxu0  ;;  %v2315_v59 = vpop.f32.mrb[57].mxu1 }
 0x3ac   : > { %1956 = vst [vmem:[%s3340_s30 + $0x58] sm:$0xff] %v1905_v16  ;;  %v2252_v20 = vadd.f32 %v2251_v28, %v2250_v26  ;;  %v2316_v31 = vadd.f32 %v2315_v59, %v2314_v27  ;;  %v2253_v32 = vpop.f32.mrb[58].mxu0  ;;  %v2317_v54 = vpop.f32.mrb[58].mxu1 }
 0x3ad   : > { %v2254_v34 = vpop.f32.mrb[59].mxu0  ;;  %v2318_v43 = vpop.f32.mrb[59].mxu1 }
 0x3ae   : > { %v1880_v61 = vadd.f32 %v2316_v31, %v2252_v20  ;;  %v2255_v38 = vadd.f32 %v2254_v34, %v2253_v32  ;;  %v2319_v37 = vadd.f32 %v2318_v43, %v2317_v54 }
 0x3b0   : > { %v1906_v13 = vadd.f32 %v2544_v40, %v1880_v61  ;;  %v1883_v6 = vadd.f32 %v2319_v37, %v2255_v38 }
 0x3b2   : > { %1957 = vst [vmem:[%s3340_s30 + $0x60] sm:$0xff] %v1906_v13  ;;  %v1907_v41 = vadd.f32 %v2545_v63, %v1883_v6  ;;  %v2256_v42 = vpop.f32.mrb[60].mxu0  ;;  %v2320_v47 = vpop.f32.mrb[60].mxu1 }
 0x3b3   : > { %v2257_v62 = vpop.f32.mrb[61].mxu0  ;;  %v2321_v44 = vpop.f32.mrb[61].mxu1 }
 0x3b4   : > { %1958 = vst [vmem:[%s3340_s30 + $0x68] sm:$0xff] %v1907_v41  ;;  %v2258_v30 = vadd.f32 %v2257_v62, %v2256_v42  ;;  %v2322_v45 = vadd.f32 %v2321_v44, %v2320_v47  ;;  %v2259_v48 = vpop.f32.mrb[62].mxu0  ;;  %v2323_v50 = vpop.f32.mrb[62].mxu1 }
 0x3b5   : > { %v2260_v51 = vpop.f32.mrb[63].mxu0  ;;  %v2324_v49 = vpop.f32.mrb[63].mxu1 }
 0x3b6   : > { %v1888_v33 = vadd.f32 %v2322_v45, %v2258_v30  ;;  %v2261_v52 = vadd.f32 %v2260_v51, %v2259_v48  ;;  %v2325_v56 = vadd.f32 %v2324_v49, %v2323_v50 }
 0x3b8   : > { %v1908_v24 = vadd.f32 %v2546_v55, %v1888_v33  ;;  %v1891_v53 = vadd.f32 %v2325_v56, %v2261_v52 }
 0x3ba   : > { %1959 = vst [vmem:[%s3340_s30 + $0x70] sm:$0xff] %v1908_v24  ;;  %v1909_v57 = vadd.f32 %v2547_v17, %v1891_v53 }
 0x3bc   : > { %1960 = vst [vmem:[%s3340_s30 + $0x78] sm:$0xff] %v1909_v57 }
 0x3bd   : > { %2647 = shalt.err (!%p2644_p4)
}
 0x3be   : > { %s2648_s18 = scalar_lea.hbm %s3375_s16, 2048  ;;  %s2652_s30 = scalar_lea.hbm %s3463_s28, 4096 }
 0x3bf   : > { %p2649_p13 = scmp.ne.s32.totalorder %s3375_s16, %s2648_s18  ;;  %p2653_p2 = scmp.lt.u32.totalorder %s3375_s16, %s3463_s28 }
 0x3c0   : > { %p2654_p8 = scmp.lt.u32.totalorder %s2652_s30, %s2648_s18  ;;  %p2656_p1 = scmp.lt.u32.totalorder %s2648_s18, %s3375_s16 }
 0x3c1   : > { %p2650_p6 = pnand %p2649_p13, %p3464_p10 }
 0x3c2   : > { %p2655_p12 = por %p2654_p8, %p2653_p2 }
 0x3c3   : > { %p2651_p7 = pneg %p2650_p6 }
 0x3c4   : > { %p2657_p3 = por %p2656_p1, %p2655_p12 }
 0x3c6   : > { %p2658_p5 = pnand %p2657_p3, %p2651_p7 }
 0x3c8   : > { %2661 = shalt.err (!%p2658_p5)
}
 0x3c9   : > { %s2733_s26 = smov 128   ;;  %s2734_s12 = smov 8  }
 0x3ca   : > { %2336 = dma.vmem_to_hbm [thread:$0]  (%p3464_p10), %s3377_s20, 2048, %s3375_s16, %s1962_s15, %s2733_s26, %s2733_s26, %s2734_s12  }
 0x3cb PF: > { %s3465_s19 = sld [smem:[#allocation14_spill]]  ;;  %s3466_s2 = sld [smem:[#allocation15_spill]] }
 0x3cc   : > { %p3468_p11 = scmp.ge.s32.totalorder %s2720_s14, 2 }
 0x3d1   : > { %s1996_s21 = sand.u32 1, %s3465_s19   ;;  %p3467_p9 = scmp.ne.s32.totalorder %s3466_s2, 0 }
 0x3d2   : > { %s1997_s18 = scalar_lea.sflag [#allocation6], %s1996_s21 }
 0x3d3   : > { %p2350_p0 = pnand %p3468_p11, %p3467_p9 }
 0x3d5   : > { %2695 = dma.done.wait (!%p2350_p0), %s1997_s18, 2048  }
 0x3d6   : > { %2697 = vsyncadd (!%p2350_p0), %s1997_s18, 4294965248  ;;  %s27_s14 = sadd.s32 1, %s2720_s14   ;;  %s3469_s30 = smov %s2704_s10 }
 0x3d7   : > { %p24_p4 = scmp.ge.s32.totalorder %s27_s14, 4   ;;  %s3470_s10 = smov %s2708_s11 }
 0x3d8   : > { %s3471_s11 = smov %s2927_s22  ;;  %s3472_s12 = smov %s2716_s13 }
 0x3d9   : > { %s3473_s13 = smov %s3475_s27  ;;  %26 = sbr.rel (!%p24_p4) target bundleno = 10 (0xa), region = 130 }
 0x3e0   :  { %2008 = vsyncpa [#allocation5], 1 }
 0x3e1   :  { %2010 = vsyncpa [#allocation5 + $0x1], 1 }
 0x3e2   :  { %2011 = vsyncpa [#allocation8], 1 }
 0x3e3   :  { %2012 = vsyncpa [#allocation6], 1 }
 0x3e4   :  { %2014 = vsyncpa [#allocation6 + $0x1], 1 }

</bundles_post_ra>
